<compile_context>
chip_gen: v7x
topology: tpu7x:2x2x1
jax: 0.10.0
libtpu: 0.0.40
codegen_flags: <defaults>
</compile_context>

<pallas_src>
import math

import jax
import jax.numpy as jnp
from jax.experimental import pallas as pl
from jax.experimental.pallas import tpu as pltpu  # noqa: F401  (TPU backend import)

# ---- synthetic "BERT" config (small shapes) -------------------------------
B, S = 2, 8            # batch, sequence length
H = 32                 # hidden size
NH, DH = 2, 16         # heads, head dim
I = 64                 # FFN intermediate size
L = 2                  # encoder layers
VOCAB, MAXPOS = 100, 64
PAD_TOKEN, SEP_TOKEN = 0, 3
LN_EPS = 1e-12
BS = B * S


def _layer_norm(x, g, b, eps=LN_EPS):
    mu = jnp.mean(x, axis=-1, keepdims=True)
    var = jnp.mean((x - mu) ** 2, axis=-1, keepdims=True)
    return (x - mu) * jax.lax.rsqrt(var + eps) * g + b


def _gelu(x):
    # tanh approximation of GELU (HF BERT's exact-erf gelu is numerically very close)
    c = math.sqrt(2.0 / math.pi)
    return 0.5 * x * (1.0 + jnp.tanh(c * (x + 0.044715 * x * x * x)))


# ---------------------------------------------------------------------------
# Single fused kernel: L encoder layers + both classification heads + masking.
# ---------------------------------------------------------------------------
def fused_forward_kernel(x_ref, bias_ref, bad_ref,
                         wqkv_ref, bqkv_ref, wo_ref, bo_ref,
                         g1_ref, bln1_ref, w1_ref, b1_ref,
                         w2_ref, b2_ref, g2_ref, bln2_ref,
                         wac_ref, bac_ref,
                         out_ref):
    x = x_ref[...]                       # (B*S, H) embedded+LN'd hidden states
    bias = bias_ref[...]                 # (B*S, B*S) additive attention bias
    scale = 1.0 / math.sqrt(DH)

    for l in range(L):                   # static unroll; weights resident in VMEM
        # Fused QKV projection: one (B*S, H) @ (H, 3H) MXU pass.
        qkv = (jnp.dot(x, wqkv_ref[l], preferred_element_type=jnp.float32)
               + bqkv_ref[l])
        q = qkv[:, 0:H]
        k = qkv[:, H:2 * H]
        v = qkv[:, 2 * H:3 * H]

        wo_l = wo_ref[l]                 # (H, H)
        attn = jnp.zeros((BS, H), jnp.float32)
        for h in range(NH):              # static unrolled loop over heads
            lo = h * DH
            s = (jnp.dot(q[:, lo:lo + DH], k[:, lo:lo + DH].T,
                         preferred_element_type=jnp.float32) * scale + bias)
            s = s - jnp.max(s, axis=-1, keepdims=True)
            e = jnp.exp(s)
            p = e * pl.reciprocal(jnp.sum(e, axis=-1, keepdims=True), approx=True)
            ctx_h = jnp.dot(p, v[:, lo:lo + DH],
                            preferred_element_type=jnp.float32)       # (B*S, DH)
            # output projection accumulated per head (avoids concat)
            attn = attn + jnp.dot(ctx_h, wo_l[lo:lo + DH, :],
                                  preferred_element_type=jnp.float32)
        attn = attn + bo_ref[l]

        x1 = _layer_norm(x + attn, g1_ref[l], bln1_ref[l])

        hmid = _gelu(jnp.dot(x1, w1_ref[l], preferred_element_type=jnp.float32)
                     + b1_ref[l])
        ffn = (jnp.dot(hmid, w2_ref[l], preferred_element_type=jnp.float32)
               + b2_ref[l])
        x = _layer_norm(x1 + ffn, g2_ref[l], bln2_ref[l])

    # Fused a/c heads: one (B*S, H) @ (H, 4) matmul; pad/sep positions -> -inf.
    logits = jnp.dot(x, wac_ref[...], preferred_element_type=jnp.float32) + bac_ref[...]
    out_ref[...] = jnp.where(bad_ref[...] > 0.5, jnp.float32(-jnp.inf), logits)


# ---------------------------------------------------------------------------
# Glue: embeddings + mask construction + full forward pass.
# ---------------------------------------------------------------------------
def transformer_for_ecfr_forward(tokens, attn_mask, params):
    # Embedding gather + embedding LayerNorm (dropout is identity in eval mode).
    we = params['word_emb'][tokens]                       # (B, S, H) gather (glue)
    pe = params['pos_emb'][:S][None, :, :]
    te = params['type_emb'][0][None, None, :]
    x = _layer_norm(we + pe + te, params['emb_ln_g'], params['emb_ln_b'])
    x_flat = x.reshape(BS, H)

    # Additive attention bias over the flattened batch: 0 where query/key are in
    # the same batch element AND the key is a real token, -1e9 otherwise
    # (matches HF BERT's (1-mask)*-1e9 extended attention mask per batch).
    batch_ids = jnp.arange(BS) // S
    same_batch = (batch_ids[:, None] == batch_ids[None, :]).astype(jnp.float32)
    key_ok = attn_mask.astype(jnp.float32).reshape(BS)[None, :]
    attn_bias = (same_batch * key_ok - 1.0) * 1e9          # (B*S, B*S)

    # pad/sep positions get -inf logits (same as PyTorch masked_fill_).
    bad = ((tokens == PAD_TOKEN) | (tokens == SEP_TOKEN)).astype(jnp.float32)
    bad = bad.reshape(BS, 1)

    lw = params['layers_stacked']
    logits = pl.pallas_call(
        fused_forward_kernel,
        out_shape=jax.ShapeDtypeStruct((BS, 4), jnp.float32),
    )(x_flat, attn_bias, bad,
      lw['wqkv'], lw['bqkv'], lw['wo'], lw['bo'],
      lw['g1'], lw['bln1'], lw['w1'], lw['b1'],
      lw['w2'], lw['b2'], lw['g2'], lw['bln2'],
      params['wac'], params['bac'])

    # split(1, dim=-1) + squeeze(-1) and the [:, 1:] antecedent slice (pure glue).
    logits = logits.reshape(B, S, 4)
    antecedent_log_s = logits[:, 1:, 0]
    antecedent_log_e = logits[:, 1:, 1]
    consequent_log_s = logits[:, :, 2]
    consequent_log_e = logits[:, :, 3]
    return antecedent_log_s, antecedent_log_e, consequent_log_s, consequent_log_e


def init_params(key):
    ks = iter(jax.random.split(key, 8 + L * 8))

    def nrm(shape):
        return 0.02 * jax.random.normal(next(ks), shape, jnp.float32)

    layers = dict(wqkv=[], bqkv=[], wo=[], bo=[], g1=[], bln1=[],
                  w1=[], b1=[], w2=[], b2=[], g2=[], bln2=[])
    for _ in range(L):
        wq, wk, wv = nrm((H, H)), nrm((H, H)), nrm((H, H))
        layers['wqkv'].append(jnp.concatenate([wq, wk, wv], axis=1))   # (H, 3H)
        layers['bqkv'].append(jnp.zeros((1, 3 * H), jnp.float32))
        layers['wo'].append(nrm((H, H)))
        layers['bo'].append(jnp.zeros((1, H), jnp.float32))
        layers['g1'].append(jnp.ones((1, H), jnp.float32))
        layers['bln1'].append(jnp.zeros((1, H), jnp.float32))
        layers['w1'].append(nrm((H, I)))
        layers['b1'].append(jnp.zeros((1, I), jnp.float32))
        layers['w2'].append(nrm((I, H)))
        layers['b2'].append(jnp.zeros((1, H), jnp.float32))
        layers['g2'].append(jnp.ones((1, H), jnp.float32))
        layers['bln2'].append(jnp.zeros((1, H), jnp.float32))
    layers_stacked = {k: jnp.stack(v, axis=0) for k, v in layers.items()}

    wa, wc = nrm((H, 2)), nrm((H, 2))                      # a_lin / c_lin heads
    return dict(
        word_emb=nrm((VOCAB, H)),
        pos_emb=nrm((MAXPOS, H)),
        type_emb=nrm((2, H)),
        emb_ln_g=jnp.ones((H,), jnp.float32),
        emb_ln_b=jnp.zeros((H,), jnp.float32),
        layers_stacked=layers_stacked,
        wac=jnp.concatenate([wa, wc], axis=1),             # (H, 4) fused heads
        bac=jnp.zeros((1, 4), jnp.float32),
    )


if __name__ == "__main__":
    key = jax.random.PRNGKey(0)
    pkey, tkey = jax.random.split(key)
    params = init_params(pkey)

    # batch.sentence: token ids; batch.sentence_padding: attention mask
    tokens = jax.random.randint(tkey, (B, S), 4, VOCAB, dtype=jnp.int32)
    tokens = tokens.at[:, 0].set(1)              # [CLS]
    tokens = tokens.at[0, 5].set(SEP_TOKEN)      # [SEP]
    tokens = tokens.at[0, 6:].set(PAD_TOKEN)     # padding
    tokens = tokens.at[1, 7].set(SEP_TOKEN)
    attn_mask = (tokens != PAD_TOKEN).astype(jnp.float32)

    fwd = jax.jit(transformer_for_ecfr_forward)
    outs = fwd(tokens, attn_mask, params)
    outs = jax.block_until_ready(outs)
    assert outs[0].shape == (B, S - 1) and outs[1].shape == (B, S - 1)
    assert outs[2].shape == (B, S) and outs[3].shape == (B, S)
    print("KERNEL_OK")
</pallas_src>

<mosaic_0001>
module attributes {stable_mosaic.version = 11 : i64} {
  func.func @fused_forward_kernel(%arg0: memref<16x32xf32, #tpu.memory_space<vmem>>, %arg1: memref<16x16xf32, #tpu.memory_space<vmem>>, %arg2: memref<16x1xf32, #tpu.memory_space<vmem>>, %arg3: memref<2x32x96xf32, #tpu.memory_space<vmem>>, %arg4: memref<2x1x96xf32, #tpu.memory_space<vmem>>, %arg5: memref<2x32x32xf32, #tpu.memory_space<vmem>>, %arg6: memref<2x1x32xf32, #tpu.memory_space<vmem>>, %arg7: memref<2x1x32xf32, #tpu.memory_space<vmem>>, %arg8: memref<2x1x32xf32, #tpu.memory_space<vmem>>, %arg9: memref<2x32x64xf32, #tpu.memory_space<vmem>>, %arg10: memref<2x1x64xf32, #tpu.memory_space<vmem>>, %arg11: memref<2x64x32xf32, #tpu.memory_space<vmem>>, %arg12: memref<2x1x32xf32, #tpu.memory_space<vmem>>, %arg13: memref<2x1x32xf32, #tpu.memory_space<vmem>>, %arg14: memref<2x1x32xf32, #tpu.memory_space<vmem>>, %arg15: memref<32x4xf32, #tpu.memory_space<vmem>>, %arg16: memref<1x4xf32, #tpu.memory_space<vmem>>, %arg17: memref<16x4xf32, #tpu.memory_space<vmem>>) attributes {dimension_semantics = [], scalar_prefetch = 0 : i64, scratch_operands = 0 : i64, tpu.core_type = #tpu.core_type<tc>} {
    %c0 = arith.constant 0 : index
    %c0_0 = arith.constant 0 : index
    %0 = vector.load %arg0[%c0, %c0_0] : memref<16x32xf32, #tpu.memory_space<vmem>>, vector<16x32xf32>
    %c0_1 = arith.constant 0 : index
    %c0_2 = arith.constant 0 : index
    %1 = vector.load %arg1[%c0_1, %c0_2] : memref<16x16xf32, #tpu.memory_space<vmem>>, vector<16x16xf32>
    %c0_3 = arith.constant 0 : index
    %c0_4 = arith.constant 0 : index
    %c0_5 = arith.constant 0 : index
    %2 = vector.load %arg3[%c0_3, %c0_4, %c0_5] : memref<2x32x96xf32, #tpu.memory_space<vmem>>, vector<1x32x96xf32>
    %3 = vector.shape_cast %2 : vector<1x32x96xf32> to vector<32x96xf32>
    %cst = arith.constant dense<0.000000e+00> : vector<16x96xf32>
    %4 = tpu.matmul %0, %3, %cst {dimension_numbers = #tpu.dot_dimension_numbers<[1], [0], [0], [1], [0, 0, 1, 1], [], []>} : vector<16x32xf32>, vector<32x96xf32>, vector<16x96xf32> -> vector<16x96xf32>
    %c0_6 = arith.constant 0 : index
    %c0_7 = arith.constant 0 : index
    %c0_8 = arith.constant 0 : index
    %5 = vector.load %arg4[%c0_6, %c0_7, %c0_8] : memref<2x1x96xf32, #tpu.memory_space<vmem>>, vector<1x1x96xf32>
    %6 = vector.shape_cast %5 : vector<1x1x96xf32> to vector<1x96xf32>
    %7 = vector.broadcast %6 : vector<1x96xf32> to vector<16x96xf32>
    %8 = arith.addf %4, %7 : vector<16x96xf32>
    %9 = vector.extract_strided_slice %8 {offsets = [0, 0], sizes = [16, 32], strides = [1, 1]} : vector<16x96xf32> to vector<16x32xf32>
    %10 = vector.extract_strided_slice %8 {offsets = [0, 32], sizes = [16, 32], strides = [1, 1]} : vector<16x96xf32> to vector<16x32xf32>
    %11 = vector.extract_strided_slice %8 {offsets = [0, 64], sizes = [16, 32], strides = [1, 1]} : vector<16x96xf32> to vector<16x32xf32>
    %c0_9 = arith.constant 0 : index
    %c0_10 = arith.constant 0 : index
    %c0_11 = arith.constant 0 : index
    %12 = vector.load %arg5[%c0_9, %c0_10, %c0_11] : memref<2x32x32xf32, #tpu.memory_space<vmem>>, vector<1x32x32xf32>
    %13 = vector.shape_cast %12 : vector<1x32x32xf32> to vector<32x32xf32>
    %cst_12 = arith.constant 0.000000e+00 : f32
    %14 = vector.broadcast %cst_12 : f32 to vector<16x32xf32>
    %15 = vector.extract_strided_slice %9 {offsets = [0, 0], sizes = [16, 16], strides = [1, 1]} : vector<16x32xf32> to vector<16x16xf32>
    %16 = vector.extract_strided_slice %10 {offsets = [0, 0], sizes = [16, 16], strides = [1, 1]} : vector<16x32xf32> to vector<16x16xf32>
    %17 = tpu.transpose %16, [1, 0] : vector<16x16xf32> -> vector<16x16xf32>
    %cst_13 = arith.constant dense<0.000000e+00> : vector<16x16xf32>
    %18 = tpu.matmul %15, %17, %cst_13 {dimension_numbers = #tpu.dot_dimension_numbers<[1], [0], [0], [1], [0, 0, 1, 1], [], []>} : vector<16x16xf32>, vector<16x16xf32>, vector<16x16xf32> -> vector<16x16xf32>
    %cst_14 = arith.constant 2.500000e-01 : f32
    %19 = vector.broadcast %cst_14 : f32 to vector<16x16xf32>
    %20 = arith.mulf %18, %19 : vector<16x16xf32>
    %21 = arith.addf %20, %1 : vector<16x16xf32>
    %cst_15 = arith.constant dense<0xFF800000> : vector<16xf32>
    %22 = vector.multi_reduction <maximumf>, %21, %cst_15 [1] : vector<16x16xf32> to vector<16xf32>
    %23 = vector.shape_cast %22 : vector<16xf32> to vector<16x1xf32>
    %24 = vector.broadcast %23 : vector<16x1xf32> to vector<16x16xf32>
    %25 = arith.subf %21, %24 : vector<16x16xf32>
    %26 = math.exp %25 : vector<16x16xf32>
    %cst_16 = arith.constant dense<0.000000e+00> : vector<16xf32>
    %27 = vector.multi_reduction <add>, %26, %cst_16 [1] : vector<16x16xf32> to vector<16xf32>
    %28 = vector.shape_cast %27 : vector<16xf32> to vector<16x1xf32>
    %29 = tpu.reciprocal %28 {approx = true} : vector<16x1xf32> -> vector<16x1xf32>
    %30 = vector.broadcast %29 : vector<16x1xf32> to vector<16x16xf32>
    %31 = arith.mulf %26, %30 : vector<16x16xf32>
    %32 = vector.extract_strided_slice %11 {offsets = [0, 0], sizes = [16, 16], strides = [1, 1]} : vector<16x32xf32> to vector<16x16xf32>
    %cst_17 = arith.constant dense<0.000000e+00> : vector<16x16xf32>
    %33 = tpu.matmul %31, %32, %cst_17 {dimension_numbers = #tpu.dot_dimension_numbers<[1], [0], [0], [1], [0, 0, 1, 1], [], []>} : vector<16x16xf32>, vector<16x16xf32>, vector<16x16xf32> -> vector<16x16xf32>
    %34 = vector.extract_strided_slice %13 {offsets = [0, 0], sizes = [16, 32], strides = [1, 1]} : vector<32x32xf32> to vector<16x32xf32>
    %cst_18 = arith.constant dense<0.000000e+00> : vector<16x32xf32>
    %35 = tpu.matmul %33, %34, %cst_18 {dimension_numbers = #tpu.dot_dimension_numbers<[1], [0], [0], [1], [0, 0, 1, 1], [], []>} : vector<16x16xf32>, vector<16x32xf32>, vector<16x32xf32> -> vector<16x32xf32>
    %36 = arith.addf %14, %35 : vector<16x32xf32>
    %37 = vector.extract_strided_slice %9 {offsets = [0, 16], sizes = [16, 16], strides = [1, 1]} : vector<16x32xf32> to vector<16x16xf32>
    %38 = vector.extract_strided_slice %10 {offsets = [0, 16], sizes = [16, 16], strides = [1, 1]} : vector<16x32xf32> to vector<16x16xf32>
    %39 = tpu.transpose %38, [1, 0] : vector<16x16xf32> -> vector<16x16xf32>
    %cst_19 = arith.constant dense<0.000000e+00> : vector<16x16xf32>
    %40 = tpu.matmul %37, %39, %cst_19 {dimension_numbers = #tpu.dot_dimension_numbers<[1], [0], [0], [1], [0, 0, 1, 1], [], []>} : vector<16x16xf32>, vector<16x16xf32>, vector<16x16xf32> -> vector<16x16xf32>
    %cst_20 = arith.constant 2.500000e-01 : f32
    %41 = vector.broadcast %cst_20 : f32 to vector<16x16xf32>
    %42 = arith.mulf %40, %41 : vector<16x16xf32>
    %43 = arith.addf %42, %1 : vector<16x16xf32>
    %cst_21 = arith.constant dense<0xFF800000> : vector<16xf32>
    %44 = vector.multi_reduction <maximumf>, %43, %cst_21 [1] : vector<16x16xf32> to vector<16xf32>
    %45 = vector.shape_cast %44 : vector<16xf32> to vector<16x1xf32>
    %46 = vector.broadcast %45 : vector<16x1xf32> to vector<16x16xf32>
    %47 = arith.subf %43, %46 : vector<16x16xf32>
    %48 = math.exp %47 : vector<16x16xf32>
    %cst_22 = arith.constant dense<0.000000e+00> : vector<16xf32>
    %49 = vector.multi_reduction <add>, %48, %cst_22 [1] : vector<16x16xf32> to vector<16xf32>
    %50 = vector.shape_cast %49 : vector<16xf32> to vector<16x1xf32>
    %51 = tpu.reciprocal %50 {approx = true} : vector<16x1xf32> -> vector<16x1xf32>
    %52 = vector.broadcast %51 : vector<16x1xf32> to vector<16x16xf32>
    %53 = arith.mulf %48, %52 : vector<16x16xf32>
    %54 = vector.extract_strided_slice %11 {offsets = [0, 16], sizes = [16, 16], strides = [1, 1]} : vector<16x32xf32> to vector<16x16xf32>
    %cst_23 = arith.constant dense<0.000000e+00> : vector<16x16xf32>
    %55 = tpu.matmul %53, %54, %cst_23 {dimension_numbers = #tpu.dot_dimension_numbers<[1], [0], [0], [1], [0, 0, 1, 1], [], []>} : vector<16x16xf32>, vector<16x16xf32>, vector<16x16xf32> -> vector<16x16xf32>
    %56 = vector.extract_strided_slice %13 {offsets = [16, 0], sizes = [16, 32], strides = [1, 1]} : vector<32x32xf32> to vector<16x32xf32>
    %cst_24 = arith.constant dense<0.000000e+00> : vector<16x32xf32>
    %57 = tpu.matmul %55, %56, %cst_24 {dimension_numbers = #tpu.dot_dimension_numbers<[1], [0], [0], [1], [0, 0, 1, 1], [], []>} : vector<16x16xf32>, vector<16x32xf32>, vector<16x32xf32> -> vector<16x32xf32>
    %58 = arith.addf %36, %57 : vector<16x32xf32>
    %c0_25 = arith.constant 0 : index
    %c0_26 = arith.constant 0 : index
    %c0_27 = arith.constant 0 : index
    %59 = vector.load %arg6[%c0_25, %c0_26, %c0_27] : memref<2x1x32xf32, #tpu.memory_space<vmem>>, vector<1x1x32xf32>
    %60 = vector.shape_cast %59 : vector<1x1x32xf32> to vector<1x32xf32>
    %61 = vector.broadcast %60 : vector<1x32xf32> to vector<16x32xf32>
    %62 = arith.addf %58, %61 : vector<16x32xf32>
    %63 = arith.addf %0, %62 : vector<16x32xf32>
    %c0_28 = arith.constant 0 : index
    %c0_29 = arith.constant 0 : index
    %c0_30 = arith.constant 0 : index
    %64 = vector.load %arg7[%c0_28, %c0_29, %c0_30] : memref<2x1x32xf32, #tpu.memory_space<vmem>>, vector<1x1x32xf32>
    %65 = vector.shape_cast %64 : vector<1x1x32xf32> to vector<1x32xf32>
    %c0_31 = arith.constant 0 : index
    %c0_32 = arith.constant 0 : index
    %c0_33 = arith.constant 0 : index
    %66 = vector.load %arg8[%c0_31, %c0_32, %c0_33] : memref<2x1x32xf32, #tpu.memory_space<vmem>>, vector<1x1x32xf32>
    %67 = vector.shape_cast %66 : vector<1x1x32xf32> to vector<1x32xf32>
    %cst_34 = arith.constant dense<0.000000e+00> : vector<16xf32>
    %68 = vector.multi_reduction <add>, %63, %cst_34 [1] : vector<16x32xf32> to vector<16xf32>
    %69 = vector.shape_cast %68 : vector<16xf32> to vector<16x1xf32>
    %cst_35 = arith.constant 3.200000e+01 : f32
    %70 = vector.broadcast %cst_35 : f32 to vector<16x1xf32>
    %71 = arith.divf %69, %70 : vector<16x1xf32>
    %72 = vector.broadcast %71 : vector<16x1xf32> to vector<16x32xf32>
    %73 = arith.subf %63, %72 : vector<16x32xf32>
    %74 = arith.mulf %73, %73 : vector<16x32xf32>
    %cst_36 = arith.constant dense<0.000000e+00> : vector<16xf32>
    %75 = vector.multi_reduction <add>, %74, %cst_36 [1] : vector<16x32xf32> to vector<16xf32>
    %76 = vector.shape_cast %75 : vector<16xf32> to vector<16x1xf32>
    %cst_37 = arith.constant 3.200000e+01 : f32
    %77 = vector.broadcast %cst_37 : f32 to vector<16x1xf32>
    %78 = arith.divf %76, %77 : vector<16x1xf32>
    %79 = vector.broadcast %71 : vector<16x1xf32> to vector<16x32xf32>
    %80 = arith.subf %63, %79 : vector<16x32xf32>
    %cst_38 = arith.constant 9.99999996E-13 : f32
    %81 = vector.broadcast %cst_38 : f32 to vector<16x1xf32>
    %82 = arith.addf %78, %81 : vector<16x1xf32>
    %83 = math.rsqrt %82 : vector<16x1xf32>
    %84 = vector.broadcast %83 : vector<16x1xf32> to vector<16x32xf32>
    %85 = arith.mulf %80, %84 : vector<16x32xf32>
    %86 = vector.broadcast %65 : vector<1x32xf32> to vector<16x32xf32>
    %87 = arith.mulf %85, %86 : vector<16x32xf32>
    %88 = vector.broadcast %67 : vector<1x32xf32> to vector<16x32xf32>
    %89 = arith.addf %87, %88 : vector<16x32xf32>
    %c0_39 = arith.constant 0 : index
    %c0_40 = arith.constant 0 : index
    %c0_41 = arith.constant 0 : index
    %90 = vector.load %arg9[%c0_39, %c0_40, %c0_41] : memref<2x32x64xf32, #tpu.memory_space<vmem>>, vector<1x32x64xf32>
    %91 = vector.shape_cast %90 : vector<1x32x64xf32> to vector<32x64xf32>
    %cst_42 = arith.constant dense<0.000000e+00> : vector<16x64xf32>
    %92 = tpu.matmul %89, %91, %cst_42 {dimension_numbers = #tpu.dot_dimension_numbers<[1], [0], [0], [1], [0, 0, 1, 1], [], []>} : vector<16x32xf32>, vector<32x64xf32>, vector<16x64xf32> -> vector<16x64xf32>
    %c0_43 = arith.constant 0 : index
    %c0_44 = arith.constant 0 : index
    %c0_45 = arith.constant 0 : index
    %93 = vector.load %arg10[%c0_43, %c0_44, %c0_45] : memref<2x1x64xf32, #tpu.memory_space<vmem>>, vector<1x1x64xf32>
    %94 = vector.shape_cast %93 : vector<1x1x64xf32> to vector<1x64xf32>
    %95 = vector.broadcast %94 : vector<1x64xf32> to vector<16x64xf32>
    %96 = arith.addf %92, %95 : vector<16x64xf32>
    %cst_46 = arith.constant 5.000000e-01 : f32
    %97 = vector.broadcast %cst_46 : f32 to vector<16x64xf32>
    %98 = arith.mulf %97, %96 : vector<16x64xf32>
    %cst_47 = arith.constant 4.471500e-02 : f32
    %99 = vector.broadcast %cst_47 : f32 to vector<16x64xf32>
    %100 = arith.mulf %99, %96 : vector<16x64xf32>
    %101 = arith.mulf %100, %96 : vector<16x64xf32>
    %102 = arith.mulf %101, %96 : vector<16x64xf32>
    %103 = arith.addf %96, %102 : vector<16x64xf32>
    %cst_48 = arith.constant 0.797884583 : f32
    %104 = vector.broadcast %cst_48 : f32 to vector<16x64xf32>
    %105 = arith.mulf %104, %103 : vector<16x64xf32>
    %106 = math.tanh %105 : vector<16x64xf32>
    %cst_49 = arith.constant 1.000000e+00 : f32
    %107 = vector.broadcast %cst_49 : f32 to vector<16x64xf32>
    %108 = arith.addf %107, %106 : vector<16x64xf32>
    %109 = arith.mulf %98, %108 : vector<16x64xf32>
    %c0_50 = arith.constant 0 : index
    %c0_51 = arith.constant 0 : index
    %c0_52 = arith.constant 0 : index
    %110 = vector.load %arg11[%c0_50, %c0_51, %c0_52] : memref<2x64x32xf32, #tpu.memory_space<vmem>>, vector<1x64x32xf32>
    %111 = vector.shape_cast %110 : vector<1x64x32xf32> to vector<64x32xf32>
    %cst_53 = arith.constant dense<0.000000e+00> : vector<16x32xf32>
    %112 = tpu.matmul %109, %111, %cst_53 {dimension_numbers = #tpu.dot_dimension_numbers<[1], [0], [0], [1], [0, 0, 1, 1], [], []>} : vector<16x64xf32>, vector<64x32xf32>, vector<16x32xf32> -> vector<16x32xf32>
    %c0_54 = arith.constant 0 : index
    %c0_55 = arith.constant 0 : index
    %c0_56 = arith.constant 0 : index
    %113 = vector.load %arg12[%c0_54, %c0_55, %c0_56] : memref<2x1x32xf32, #tpu.memory_space<vmem>>, vector<1x1x32xf32>
    %114 = vector.shape_cast %113 : vector<1x1x32xf32> to vector<1x32xf32>
    %115 = vector.broadcast %114 : vector<1x32xf32> to vector<16x32xf32>
    %116 = arith.addf %112, %115 : vector<16x32xf32>
    %117 = arith.addf %89, %116 : vector<16x32xf32>
    %c0_57 = arith.constant 0 : index
    %c0_58 = arith.constant 0 : index
    %c0_59 = arith.constant 0 : index
    %118 = vector.load %arg13[%c0_57, %c0_58, %c0_59] : memref<2x1x32xf32, #tpu.memory_space<vmem>>, vector<1x1x32xf32>
    %119 = vector.shape_cast %118 : vector<1x1x32xf32> to vector<1x32xf32>
    %c0_60 = arith.constant 0 : index
    %c0_61 = arith.constant 0 : index
    %c0_62 = arith.constant 0 : index
    %120 = vector.load %arg14[%c0_60, %c0_61, %c0_62] : memref<2x1x32xf32, #tpu.memory_space<vmem>>, vector<1x1x32xf32>
    %121 = vector.shape_cast %120 : vector<1x1x32xf32> to vector<1x32xf32>
    %cst_63 = arith.constant dense<0.000000e+00> : vector<16xf32>
    %122 = vector.multi_reduction <add>, %117, %cst_63 [1] : vector<16x32xf32> to vector<16xf32>
    %123 = vector.shape_cast %122 : vector<16xf32> to vector<16x1xf32>
    %cst_64 = arith.constant 3.200000e+01 : f32
    %124 = vector.broadcast %cst_64 : f32 to vector<16x1xf32>
    %125 = arith.divf %123, %124 : vector<16x1xf32>
    %126 = vector.broadcast %125 : vector<16x1xf32> to vector<16x32xf32>
    %127 = arith.subf %117, %126 : vector<16x32xf32>
    %128 = arith.mulf %127, %127 : vector<16x32xf32>
    %cst_65 = arith.constant dense<0.000000e+00> : vector<16xf32>
    %129 = vector.multi_reduction <add>, %128, %cst_65 [1] : vector<16x32xf32> to vector<16xf32>
    %130 = vector.shape_cast %129 : vector<16xf32> to vector<16x1xf32>
    %cst_66 = arith.constant 3.200000e+01 : f32
    %131 = vector.broadcast %cst_66 : f32 to vector<16x1xf32>
    %132 = arith.divf %130, %131 : vector<16x1xf32>
    %133 = vector.broadcast %125 : vector<16x1xf32> to vector<16x32xf32>
    %134 = arith.subf %117, %133 : vector<16x32xf32>
    %cst_67 = arith.constant 9.99999996E-13 : f32
    %135 = vector.broadcast %cst_67 : f32 to vector<16x1xf32>
    %136 = arith.addf %132, %135 : vector<16x1xf32>
    %137 = math.rsqrt %136 : vector<16x1xf32>
    %138 = vector.broadcast %137 : vector<16x1xf32> to vector<16x32xf32>
    %139 = arith.mulf %134, %138 : vector<16x32xf32>
    %140 = vector.broadcast %119 : vector<1x32xf32> to vector<16x32xf32>
    %141 = arith.mulf %139, %140 : vector<16x32xf32>
    %142 = vector.broadcast %121 : vector<1x32xf32> to vector<16x32xf32>
    %143 = arith.addf %141, %142 : vector<16x32xf32>
    %c1 = arith.constant 1 : index
    %c0_68 = arith.constant 0 : index
    %c0_69 = arith.constant 0 : index
    %144 = vector.load %arg3[%c1, %c0_68, %c0_69] : memref<2x32x96xf32, #tpu.memory_space<vmem>>, vector<1x32x96xf32>
    %145 = vector.shape_cast %144 : vector<1x32x96xf32> to vector<32x96xf32>
    %cst_70 = arith.constant dense<0.000000e+00> : vector<16x96xf32>
    %146 = tpu.matmul %143, %145, %cst_70 {dimension_numbers = #tpu.dot_dimension_numbers<[1], [0], [0], [1], [0, 0, 1, 1], [], []>} : vector<16x32xf32>, vector<32x96xf32>, vector<16x96xf32> -> vector<16x96xf32>
    %c1_71 = arith.constant 1 : index
    %c0_72 = arith.constant 0 : index
    %c0_73 = arith.constant 0 : index
    %147 = vector.load %arg4[%c1_71, %c0_72, %c0_73] : memref<2x1x96xf32, #tpu.memory_space<vmem>>, vector<1x1x96xf32>
    %148 = vector.shape_cast %147 : vector<1x1x96xf32> to vector<1x96xf32>
    %149 = vector.broadcast %148 : vector<1x96xf32> to vector<16x96xf32>
    %150 = arith.addf %146, %149 : vector<16x96xf32>
    %151 = vector.extract_strided_slice %150 {offsets = [0, 0], sizes = [16, 32], strides = [1, 1]} : vector<16x96xf32> to vector<16x32xf32>
    %152 = vector.extract_strided_slice %150 {offsets = [0, 32], sizes = [16, 32], strides = [1, 1]} : vector<16x96xf32> to vector<16x32xf32>
    %153 = vector.extract_strided_slice %150 {offsets = [0, 64], sizes = [16, 32], strides = [1, 1]} : vector<16x96xf32> to vector<16x32xf32>
    %c1_74 = arith.constant 1 : index
    %c0_75 = arith.constant 0 : index
    %c0_76 = arith.constant 0 : index
    %154 = vector.load %arg5[%c1_74, %c0_75, %c0_76] : memref<2x32x32xf32, #tpu.memory_space<vmem>>, vector<1x32x32xf32>
    %155 = vector.shape_cast %154 : vector<1x32x32xf32> to vector<32x32xf32>
    %cst_77 = arith.constant 0.000000e+00 : f32
    %156 = vector.broadcast %cst_77 : f32 to vector<16x32xf32>
    %157 = vector.extract_strided_slice %151 {offsets = [0, 0], sizes = [16, 16], strides = [1, 1]} : vector<16x32xf32> to vector<16x16xf32>
    %158 = vector.extract_strided_slice %152 {offsets = [0, 0], sizes = [16, 16], strides = [1, 1]} : vector<16x32xf32> to vector<16x16xf32>
    %159 = tpu.transpose %158, [1, 0] : vector<16x16xf32> -> vector<16x16xf32>
    %cst_78 = arith.constant dense<0.000000e+00> : vector<16x16xf32>
    %160 = tpu.matmul %157, %159, %cst_78 {dimension_numbers = #tpu.dot_dimension_numbers<[1], [0], [0], [1], [0, 0, 1, 1], [], []>} : vector<16x16xf32>, vector<16x16xf32>, vector<16x16xf32> -> vector<16x16xf32>
    %cst_79 = arith.constant 2.500000e-01 : f32
    %161 = vector.broadcast %cst_79 : f32 to vector<16x16xf32>
    %162 = arith.mulf %160, %161 : vector<16x16xf32>
    %163 = arith.addf %162, %1 : vector<16x16xf32>
    %cst_80 = arith.constant dense<0xFF800000> : vector<16xf32>
    %164 = vector.multi_reduction <maximumf>, %163, %cst_80 [1] : vector<16x16xf32> to vector<16xf32>
    %165 = vector.shape_cast %164 : vector<16xf32> to vector<16x1xf32>
    %166 = vector.broadcast %165 : vector<16x1xf32> to vector<16x16xf32>
    %167 = arith.subf %163, %166 : vector<16x16xf32>
    %168 = math.exp %167 : vector<16x16xf32>
    %cst_81 = arith.constant dense<0.000000e+00> : vector<16xf32>
    %169 = vector.multi_reduction <add>, %168, %cst_81 [1] : vector<16x16xf32> to vector<16xf32>
    %170 = vector.shape_cast %169 : vector<16xf32> to vector<16x1xf32>
    %171 = tpu.reciprocal %170 {approx = true} : vector<16x1xf32> -> vector<16x1xf32>
    %172 = vector.broadcast %171 : vector<16x1xf32> to vector<16x16xf32>
    %173 = arith.mulf %168, %172 : vector<16x16xf32>
    %174 = vector.extract_strided_slice %153 {offsets = [0, 0], sizes = [16, 16], strides = [1, 1]} : vector<16x32xf32> to vector<16x16xf32>
    %cst_82 = arith.constant dense<0.000000e+00> : vector<16x16xf32>
    %175 = tpu.matmul %173, %174, %cst_82 {dimension_numbers = #tpu.dot_dimension_numbers<[1], [0], [0], [1], [0, 0, 1, 1], [], []>} : vector<16x16xf32>, vector<16x16xf32>, vector<16x16xf32> -> vector<16x16xf32>
    %176 = vector.extract_strided_slice %155 {offsets = [0, 0], sizes = [16, 32], strides = [1, 1]} : vector<32x32xf32> to vector<16x32xf32>
    %cst_83 = arith.constant dense<0.000000e+00> : vector<16x32xf32>
    %177 = tpu.matmul %175, %176, %cst_83 {dimension_numbers = #tpu.dot_dimension_numbers<[1], [0], [0], [1], [0, 0, 1, 1], [], []>} : vector<16x16xf32>, vector<16x32xf32>, vector<16x32xf32> -> vector<16x32xf32>
    %178 = arith.addf %156, %177 : vector<16x32xf32>
    %179 = vector.extract_strided_slice %151 {offsets = [0, 16], sizes = [16, 16], strides = [1, 1]} : vector<16x32xf32> to vector<16x16xf32>
    %180 = vector.extract_strided_slice %152 {offsets = [0, 16], sizes = [16, 16], strides = [1, 1]} : vector<16x32xf32> to vector<16x16xf32>
    %181 = tpu.transpose %180, [1, 0] : vector<16x16xf32> -> vector<16x16xf32>
    %cst_84 = arith.constant dense<0.000000e+00> : vector<16x16xf32>
    %182 = tpu.matmul %179, %181, %cst_84 {dimension_numbers = #tpu.dot_dimension_numbers<[1], [0], [0], [1], [0, 0, 1, 1], [], []>} : vector<16x16xf32>, vector<16x16xf32>, vector<16x16xf32> -> vector<16x16xf32>
    %cst_85 = arith.constant 2.500000e-01 : f32
    %183 = vector.broadcast %cst_85 : f32 to vector<16x16xf32>
    %184 = arith.mulf %182, %183 : vector<16x16xf32>
    %185 = arith.addf %184, %1 : vector<16x16xf32>
    %cst_86 = arith.constant dense<0xFF800000> : vector<16xf32>
    %186 = vector.multi_reduction <maximumf>, %185, %cst_86 [1] : vector<16x16xf32> to vector<16xf32>
    %187 = vector.shape_cast %186 : vector<16xf32> to vector<16x1xf32>
    %188 = vector.broadcast %187 : vector<16x1xf32> to vector<16x16xf32>
    %189 = arith.subf %185, %188 : vector<16x16xf32>
    %190 = math.exp %189 : vector<16x16xf32>
    %cst_87 = arith.constant dense<0.000000e+00> : vector<16xf32>
    %191 = vector.multi_reduction <add>, %190, %cst_87 [1] : vector<16x16xf32> to vector<16xf32>
    %192 = vector.shape_cast %191 : vector<16xf32> to vector<16x1xf32>
    %193 = tpu.reciprocal %192 {approx = true} : vector<16x1xf32> -> vector<16x1xf32>
    %194 = vector.broadcast %193 : vector<16x1xf32> to vector<16x16xf32>
    %195 = arith.mulf %190, %194 : vector<16x16xf32>
    %196 = vector.extract_strided_slice %153 {offsets = [0, 16], sizes = [16, 16], strides = [1, 1]} : vector<16x32xf32> to vector<16x16xf32>
    %cst_88 = arith.constant dense<0.000000e+00> : vector<16x16xf32>
    %197 = tpu.matmul %195, %196, %cst_88 {dimension_numbers = #tpu.dot_dimension_numbers<[1], [0], [0], [1], [0, 0, 1, 1], [], []>} : vector<16x16xf32>, vector<16x16xf32>, vector<16x16xf32> -> vector<16x16xf32>
    %198 = vector.extract_strided_slice %155 {offsets = [16, 0], sizes = [16, 32], strides = [1, 1]} : vector<32x32xf32> to vector<16x32xf32>
    %cst_89 = arith.constant dense<0.000000e+00> : vector<16x32xf32>
    %199 = tpu.matmul %197, %198, %cst_89 {dimension_numbers = #tpu.dot_dimension_numbers<[1], [0], [0], [1], [0, 0, 1, 1], [], []>} : vector<16x16xf32>, vector<16x32xf32>, vector<16x32xf32> -> vector<16x32xf32>
    %200 = arith.addf %178, %199 : vector<16x32xf32>
    %c1_90 = arith.constant 1 : index
    %c0_91 = arith.constant 0 : index
    %c0_92 = arith.constant 0 : index
    %201 = vector.load %arg6[%c1_90, %c0_91, %c0_92] : memref<2x1x32xf32, #tpu.memory_space<vmem>>, vector<1x1x32xf32>
    %202 = vector.shape_cast %201 : vector<1x1x32xf32> to vector<1x32xf32>
    %203 = vector.broadcast %202 : vector<1x32xf32> to vector<16x32xf32>
    %204 = arith.addf %200, %203 : vector<16x32xf32>
    %205 = arith.addf %143, %204 : vector<16x32xf32>
    %c1_93 = arith.constant 1 : index
    %c0_94 = arith.constant 0 : index
    %c0_95 = arith.constant 0 : index
    %206 = vector.load %arg7[%c1_93, %c0_94, %c0_95] : memref<2x1x32xf32, #tpu.memory_space<vmem>>, vector<1x1x32xf32>
    %207 = vector.shape_cast %206 : vector<1x1x32xf32> to vector<1x32xf32>
    %c1_96 = arith.constant 1 : index
    %c0_97 = arith.constant 0 : index
    %c0_98 = arith.constant 0 : index
    %208 = vector.load %arg8[%c1_96, %c0_97, %c0_98] : memref<2x1x32xf32, #tpu.memory_space<vmem>>, vector<1x1x32xf32>
    %209 = vector.shape_cast %208 : vector<1x1x32xf32> to vector<1x32xf32>
    %cst_99 = arith.constant dense<0.000000e+00> : vector<16xf32>
    %210 = vector.multi_reduction <add>, %205, %cst_99 [1] : vector<16x32xf32> to vector<16xf32>
    %211 = vector.shape_cast %210 : vector<16xf32> to vector<16x1xf32>
    %cst_100 = arith.constant 3.200000e+01 : f32
    %212 = vector.broadcast %cst_100 : f32 to vector<16x1xf32>
    %213 = arith.divf %211, %212 : vector<16x1xf32>
    %214 = vector.broadcast %213 : vector<16x1xf32> to vector<16x32xf32>
    %215 = arith.subf %205, %214 : vector<16x32xf32>
    %216 = arith.mulf %215, %215 : vector<16x32xf32>
    %cst_101 = arith.constant dense<0.000000e+00> : vector<16xf32>
    %217 = vector.multi_reduction <add>, %216, %cst_101 [1] : vector<16x32xf32> to vector<16xf32>
    %218 = vector.shape_cast %217 : vector<16xf32> to vector<16x1xf32>
    %cst_102 = arith.constant 3.200000e+01 : f32
    %219 = vector.broadcast %cst_102 : f32 to vector<16x1xf32>
    %220 = arith.divf %218, %219 : vector<16x1xf32>
    %221 = vector.broadcast %213 : vector<16x1xf32> to vector<16x32xf32>
    %222 = arith.subf %205, %221 : vector<16x32xf32>
    %cst_103 = arith.constant 9.99999996E-13 : f32
    %223 = vector.broadcast %cst_103 : f32 to vector<16x1xf32>
    %224 = arith.addf %220, %223 : vector<16x1xf32>
    %225 = math.rsqrt %224 : vector<16x1xf32>
    %226 = vector.broadcast %225 : vector<16x1xf32> to vector<16x32xf32>
    %227 = arith.mulf %222, %226 : vector<16x32xf32>
    %228 = vector.broadcast %207 : vector<1x32xf32> to vector<16x32xf32>
    %229 = arith.mulf %227, %228 : vector<16x32xf32>
    %230 = vector.broadcast %209 : vector<1x32xf32> to vector<16x32xf32>
    %231 = arith.addf %229, %230 : vector<16x32xf32>
    %c1_104 = arith.constant 1 : index
    %c0_105 = arith.constant 0 : index
    %c0_106 = arith.constant 0 : index
    %232 = vector.load %arg9[%c1_104, %c0_105, %c0_106] : memref<2x32x64xf32, #tpu.memory_space<vmem>>, vector<1x32x64xf32>
    %233 = vector.shape_cast %232 : vector<1x32x64xf32> to vector<32x64xf32>
    %cst_107 = arith.constant dense<0.000000e+00> : vector<16x64xf32>
    %234 = tpu.matmul %231, %233, %cst_107 {dimension_numbers = #tpu.dot_dimension_numbers<[1], [0], [0], [1], [0, 0, 1, 1], [], []>} : vector<16x32xf32>, vector<32x64xf32>, vector<16x64xf32> -> vector<16x64xf32>
    %c1_108 = arith.constant 1 : index
    %c0_109 = arith.constant 0 : index
    %c0_110 = arith.constant 0 : index
    %235 = vector.load %arg10[%c1_108, %c0_109, %c0_110] : memref<2x1x64xf32, #tpu.memory_space<vmem>>, vector<1x1x64xf32>
    %236 = vector.shape_cast %235 : vector<1x1x64xf32> to vector<1x64xf32>
    %237 = vector.broadcast %236 : vector<1x64xf32> to vector<16x64xf32>
    %238 = arith.addf %234, %237 : vector<16x64xf32>
    %cst_111 = arith.constant 5.000000e-01 : f32
    %239 = vector.broadcast %cst_111 : f32 to vector<16x64xf32>
    %240 = arith.mulf %239, %238 : vector<16x64xf32>
    %cst_112 = arith.constant 4.471500e-02 : f32
    %241 = vector.broadcast %cst_112 : f32 to vector<16x64xf32>
    %242 = arith.mulf %241, %238 : vector<16x64xf32>
    %243 = arith.mulf %242, %238 : vector<16x64xf32>
    %244 = arith.mulf %243, %238 : vector<16x64xf32>
    %245 = arith.addf %238, %244 : vector<16x64xf32>
    %cst_113 = arith.constant 0.797884583 : f32
    %246 = vector.broadcast %cst_113 : f32 to vector<16x64xf32>
    %247 = arith.mulf %246, %245 : vector<16x64xf32>
    %248 = math.tanh %247 : vector<16x64xf32>
    %cst_114 = arith.constant 1.000000e+00 : f32
    %249 = vector.broadcast %cst_114 : f32 to vector<16x64xf32>
    %250 = arith.addf %249, %248 : vector<16x64xf32>
    %251 = arith.mulf %240, %250 : vector<16x64xf32>
    %c1_115 = arith.constant 1 : index
    %c0_116 = arith.constant 0 : index
    %c0_117 = arith.constant 0 : index
    %252 = vector.load %arg11[%c1_115, %c0_116, %c0_117] : memref<2x64x32xf32, #tpu.memory_space<vmem>>, vector<1x64x32xf32>
    %253 = vector.shape_cast %252 : vector<1x64x32xf32> to vector<64x32xf32>
    %cst_118 = arith.constant dense<0.000000e+00> : vector<16x32xf32>
    %254 = tpu.matmul %251, %253, %cst_118 {dimension_numbers = #tpu.dot_dimension_numbers<[1], [0], [0], [1], [0, 0, 1, 1], [], []>} : vector<16x64xf32>, vector<64x32xf32>, vector<16x32xf32> -> vector<16x32xf32>
    %c1_119 = arith.constant 1 : index
    %c0_120 = arith.constant 0 : index
    %c0_121 = arith.constant 0 : index
    %255 = vector.load %arg12[%c1_119, %c0_120, %c0_121] : memref<2x1x32xf32, #tpu.memory_space<vmem>>, vector<1x1x32xf32>
    %256 = vector.shape_cast %255 : vector<1x1x32xf32> to vector<1x32xf32>
    %257 = vector.broadcast %256 : vector<1x32xf32> to vector<16x32xf32>
    %258 = arith.addf %254, %257 : vector<16x32xf32>
    %259 = arith.addf %231, %258 : vector<16x32xf32>
    %c1_122 = arith.constant 1 : index
    %c0_123 = arith.constant 0 : index
    %c0_124 = arith.constant 0 : index
    %260 = vector.load %arg13[%c1_122, %c0_123, %c0_124] : memref<2x1x32xf32, #tpu.memory_space<vmem>>, vector<1x1x32xf32>
    %261 = vector.shape_cast %260 : vector<1x1x32xf32> to vector<1x32xf32>
    %c1_125 = arith.constant 1 : index
    %c0_126 = arith.constant 0 : index
    %c0_127 = arith.constant 0 : index
    %262 = vector.load %arg14[%c1_125, %c0_126, %c0_127] : memref<2x1x32xf32, #tpu.memory_space<vmem>>, vector<1x1x32xf32>
    %263 = vector.shape_cast %262 : vector<1x1x32xf32> to vector<1x32xf32>
    %cst_128 = arith.constant dense<0.000000e+00> : vector<16xf32>
    %264 = vector.multi_reduction <add>, %259, %cst_128 [1] : vector<16x32xf32> to vector<16xf32>
    %265 = vector.shape_cast %264 : vector<16xf32> to vector<16x1xf32>
    %cst_129 = arith.constant 3.200000e+01 : f32
    %266 = vector.broadcast %cst_129 : f32 to vector<16x1xf32>
    %267 = arith.divf %265, %266 : vector<16x1xf32>
    %268 = vector.broadcast %267 : vector<16x1xf32> to vector<16x32xf32>
    %269 = arith.subf %259, %268 : vector<16x32xf32>
    %270 = arith.mulf %269, %269 : vector<16x32xf32>
    %cst_130 = arith.constant dense<0.000000e+00> : vector<16xf32>
    %271 = vector.multi_reduction <add>, %270, %cst_130 [1] : vector<16x32xf32> to vector<16xf32>
    %272 = vector.shape_cast %271 : vector<16xf32> to vector<16x1xf32>
    %cst_131 = arith.constant 3.200000e+01 : f32
    %273 = vector.broadcast %cst_131 : f32 to vector<16x1xf32>
    %274 = arith.divf %272, %273 : vector<16x1xf32>
    %275 = vector.broadcast %267 : vector<16x1xf32> to vector<16x32xf32>
    %276 = arith.subf %259, %275 : vector<16x32xf32>
    %cst_132 = arith.constant 9.99999996E-13 : f32
    %277 = vector.broadcast %cst_132 : f32 to vector<16x1xf32>
    %278 = arith.addf %274, %277 : vector<16x1xf32>
    %279 = math.rsqrt %278 : vector<16x1xf32>
    %280 = vector.broadcast %279 : vector<16x1xf32> to vector<16x32xf32>
    %281 = arith.mulf %276, %280 : vector<16x32xf32>
    %282 = vector.broadcast %261 : vector<1x32xf32> to vector<16x32xf32>
    %283 = arith.mulf %281, %282 : vector<16x32xf32>
    %284 = vector.broadcast %263 : vector<1x32xf32> to vector<16x32xf32>
    %285 = arith.addf %283, %284 : vector<16x32xf32>
    %c0_133 = arith.constant 0 : index
    %c0_134 = arith.constant 0 : index
    %286 = vector.load %arg15[%c0_133, %c0_134] : memref<32x4xf32, #tpu.memory_space<vmem>>, vector<32x4xf32>
    %cst_135 = arith.constant dense<0.000000e+00> : vector<16x4xf32>
    %287 = tpu.matmul %285, %286, %cst_135 {dimension_numbers = #tpu.dot_dimension_numbers<[1], [0], [0], [1], [0, 0, 1, 1], [], []>} : vector<16x32xf32>, vector<32x4xf32>, vector<16x4xf32> -> vector<16x4xf32>
    %c0_136 = arith.constant 0 : index
    %c0_137 = arith.constant 0 : index
    %288 = vector.load %arg16[%c0_136, %c0_137] : memref<1x4xf32, #tpu.memory_space<vmem>>, vector<1x4xf32>
    %289 = vector.broadcast %288 : vector<1x4xf32> to vector<16x4xf32>
    %290 = arith.addf %287, %289 : vector<16x4xf32>
    %c0_138 = arith.constant 0 : index
    %c0_139 = arith.constant 0 : index
    %291 = vector.load %arg2[%c0_138, %c0_139] : memref<16x1xf32, #tpu.memory_space<vmem>>, vector<16x1xf32>
    %cst_140 = arith.constant 5.000000e-01 : f32
    %292 = vector.broadcast %cst_140 : f32 to vector<16x1xf32>
    %293 = arith.cmpf ogt, %291, %292 : vector<16x1xf32>
    %cst_141 = arith.constant 0xFF800000 : f32
    %294 = vector.shape_cast %293 : vector<16x1xi1> to vector<16x1xi1>
    %295 = vector.broadcast %294 : vector<16x1xi1> to vector<16x4xi1>
    %296 = vector.broadcast %cst_141 : f32 to vector<16x4xf32>
    %297 = arith.select %295, %296, %290 : vector<16x4xi1>, vector<16x4xf32>
    %c0_142 = arith.constant 0 : index
    %c0_143 = arith.constant 0 : index
    %298 = vector.load %arg17[%c0_142, %c0_143] : memref<16x4xf32, #tpu.memory_space<vmem>>, vector<16x4xf32>
    tpu.vector_store %arg17[%c0_142, %c0_143], %297 {strides = array<i32>} : memref<16x4xf32, #tpu.memory_space<vmem>>, vector<16x4xf32>,
    return
  }
}

</mosaic_0001>

<bundles_post_ra>
// kernel: mul.24
= control target key start
LH: loop header
LB: loop body
LE: loop exit
PB: predicated region body
PF: predicated region fallthrough
CT: control target
= control target key end

     0   :  { %vm7_vm0 = vcmask 64512   ;;  %vm13_vm1 = vcmask 130112   ;;  %s39_s0 = inlined_call_operand.vmem [shape: f32[2,8], index: 0, kind: input, shape index: {}]   ;;  %s40_s1 = inlined_call_operand.vmem [shape: f32[16], index: 1, kind: output, shape index: {}]  }
   0x1   :  { %v4_v0 = vld [vmem:[%s39_s0] sm:$0x3]  ;;  %s22_s0 = smov 8  }
   0x2   :  { %5 = vst [vmem:[#allocation1] sm:$0x3] %v4_v0 }
   0x9   :  { %v10_v1 = vld [vmem:[#allocation1 + $0x1] sm:$0x1]   ;;  %v6_v2 = vld [vmem:[#allocation1] sm:$0x1]  }
   0xa   :  { %11 = vrot.lane.b32.xlu0 %v10_v1, %s22_s0  ;;  %8 = vst.msk [vmem:[#allocation0] sm:$0x1] %vm7_vm0, %v6_v2  }
  0x7c   :  { %v12_v3 = vpop.permute.xlu0 %11  }
  0x7d   :  { %14 = vst.msk [vmem:[#allocation0] sm:$0x1] %vm13_vm1, %v12_v3  }
  0x84   :  { %v18_v4 = vld [vmem:[#allocation0] sm:$0x1] }
  0x85   :  { %20 = vst [vmem:[%s40_s1] sm:$0x1] %v18_v4 }

// kernel: transformer_for_ecfr_forward.1
= control target key start
LH: loop header
LB: loop body
LE: loop exit
PB: predicated region body
PF: predicated region fallthrough
CT: control target
= control target key end

     0   :  { %vm71_vm0 = vcmask 261120   ;;  %vm163_vm1 = vcmask 130048   ;;  %s2735_s25 = smov 96   ;;  %s2736_s30 = smov 64   ;;  %vm907_vm3 = vcmask 523264   ;;  %vm2126_vm7 = vcmask 31744   ;;  %s3182_s3 = inlined_call_operand.vmem [shape: f32[2,32,96], index: 3, kind: input, shape index: {}]   ;;  %s3183_s0 = inlined_call_operand.vmem [shape: f32[16,32], index: 0, kind: input, shape index: {}]   ;;  %s3184_s4 = inlined_call_operand.vmem [shape: f32[2,1,96], index: 4, kind: input, shape index: {}]   ;;  %s3185_s1 = inlined_call_operand.vmem [shape: f32[16,16], index: 1, kind: input, shape index: {}]   ;;  %s3186_s5 = inlined_call_operand.vmem [shape: f32[2,32,32], index: 5, kind: input, shape index: {}]   ;;  %s3187_s6 = inlined_call_operand.vmem [shape: f32[2,1,32], index: 6, kind: input, shape index: {}]   ;;  %s3188_s9 = inlined_call_operand.vmem [shape: f32[2,32,64], index: 9, kind: input, shape index: {}]   ;;  %s3189_s7 = inlined_call_operand.vmem [shape: f32[2,1,32], index: 7, kind: input, shape index: {}]   ;;  %s3190_s8 = inlined_call_operand.vmem [shape: f32[2,1,32], index: 8, kind: input, shape index: {}]   ;;  %s3191_s11 = inlined_call_operand.vmem [shape: f32[2,64,32], index: 11, kind: input, shape index: {}]   ;;  %s3192_s10 = inlined_call_operand.vmem [shape: f32[2,1,64], index: 10, kind: input, shape index: {}]   ;;  %s3193_s12 = inlined_call_operand.vmem [shape: f32[2,1,32], index: 12, kind: input, shape index: {}]   ;;  %s3194_s13 = inlined_call_operand.vmem [shape: f32[2,1,32], index: 13, kind: input, shape index: {}]   ;;  %s3195_s14 = inlined_call_operand.vmem [shape: f32[2,1,32], index: 14, kind: input, shape index: {}]   ;;  %s3196_s15 = inlined_call_operand.vmem [shape: f32[32,4], index: 15, kind: input, shape index: {}]   ;;  %s3197_s2 = inlined_call_operand.vmem [shape: f32[16,1], index: 2, kind: input, shape index: {}]   ;;  %s3198_s16 = inlined_call_operand.vmem [shape: f32[1,4], index: 16, kind: input, shape index: {}]   ;;  %s3199_s17 = inlined_call_operand.vmem [shape: f32[16,4], index: 17, kind: output, shape index: {}]  }
   0x1   :  { %3202 = sst [smem:[#allocation2_spill]] %s3182_s3  ;;  %v2133_v8 = vld [vmem:[%s3184_s4] ss:$0 sm:$0xff]  ;;  %vm2867_vm2 = vmpackc.low %vm163_vm1, %vm163_vm1  ;;  %v2879_v20 = vld [vmem:[%s3185_s1 + $0x8] sm:$0xff]  ;;  %s2737_s18 = smov 80  }
   0x2   :  { %3203 = sst [smem:[#allocation3_spill]] %s3183_s0  ;;  %s3204_s26 = sld [smem:[#allocation2_spill]]  ;;  %v2884_v23 = vld [vmem:[%s3185_s1] sm:$0xff] }
   0x3   :  { %s3205_s20 = sld [smem:[#allocation3_spill]]  ;;  %s2738_s1 = smov 112  }
   0x4   :  { %s2739_s19 = smov 48  }
   0x8   :  { %v60_v0 = vld [vmem:[%s3204_s26] sm:$0xff]  ;;  %v61_v1 = vld [vmem:[%s3204_s26 + $0x8] sm:$0xff]  ;;  %v62_v2 = vld [vmem:[%s3204_s26 + $0x10] sm:$0xff] }
   0x9   :  { %v2499_v3 = vpack.c.bf16 %v61_v1, %v60_v0  ;;  %v63_v4 = vld [vmem:[%s3204_s26 + $0x18] sm:$0xff]  ;;  %v2846_v5 = vld [vmem:[%s3205_s20] sm:$0xff]  ;;  %v2853_v7 = vld [vmem:[%s3205_s20 + $0x8] sm:$0xff] }
   0xa   :  { %v2503_v6 = vpack.c.bf16 %v63_v4, %v62_v2  ;;  %2330 = vmatprep.mubr.msk.f32.mxu0 %vm71_vm0, %v2846_v5 }
   0xb   :  { %2500 = vmatprep.subr.bf16.mxu0 %v2499_v3 }
   0xc   :  { %2502 = vmatpush3.bf16.msra.mxu0 %v2499_v3 }
   0xd   :  { %2504 = vmatprep.subr.bf16.mxu0 %v2503_v6 }
  0x10   :  { %2506 = vmatpush3.bf16.msra.mxu0 %v2503_v6 }
  0x13   :  { %2331 = vmatmul.mubr.msk.f32.vlgmr.msra.gmra.mrb[0].mxu0 %vm71_vm0, %v2853_v7 }
  0xe6   :  { %v2332_v9 = vpop.f32.mrb[0].mxu0 }
  0xe7   :  { %v150_v10 = vadd.f32 %v2332_v9, %v2133_v8  ;;  %v144_v11 = vpop.f32.mrb[1].mxu0 }
  0xe8   :  { %v145_v12 = vadd.f32 %v2133_v8, %v144_v11 }
  0xea   :  { %2337 = vmatprep.mubr.msk.f32.mxu1 %vm163_vm1, %v145_v12  ;;  %v2861_v13 = vpack.i.bf16 %v150_v10, %v145_v12 }
  0xec   :  { %2638 = vrot.lane.b32.xlu0 %v2861_v13, %s2735_s25 }
 0x15e   :  { %v2639_v14 = vpop.permute.xlu0 %2638 }
 0x15f   :  { %v2641_v15 = vunpack.i.h.bf16 %v2639_v14  ;;  %v2640_v16 = vunpack.i.l.bf16 %v2639_v14 }
 0x161   :  { %v2507_v18 = vpack.c.bf16 %v2641_v15, %v2640_v16 }
 0x163   :  { %2509 = vmatprep.subr.msk.bf16.mxu1 %vm2867_vm2, %v2507_v18 }
 0x164   :  { %2512 = vmatpush3.bf16.xpose.msk.msra.mxu1 %vm2867_vm2, %v2507_v18  ;;  %v155_v18 = vld [vmem:[%s3186_s5 + $0x10] sm:$0xff] }
 0x16b   :  { %2338 = vmatmul.mubr.msk.f32.vlgmr.msra.gmra.mrb[0].mxu1 %vm163_vm1, %v150_v10 }
 0x23e   :  { %v2339_v19 = vpop.f32.mrb[0].mxu1 }
 0x23f   :  { %v248_v21 = vmul.f32 0.25, %v2339_v19  ;;  %v238_v22 = vpop.f32.mrb[1].mxu1  ;;  %v156_v19 = vld [vmem:[%s3186_s5 + $0x18] sm:$0xff] }
 0x240   :  { %v247_v24 = vmul.f32 0.25, %v238_v22 }
 0x241   :  { %v250_v25 = vadd.f32 %v248_v21, %v2879_v20 }
 0x242   :  { %v249_v26 = vadd.f32 %v247_v24, %v2884_v23 }
 0x243   :  { %v254_v27 = vsel %vm163_vm1, %v250_v25, -inf }
 0x244   :  { %255 = vmax.xlane.f32.xlu1 %v254_v27  ;;  %v251_v28 = vsel %vm163_vm1, %v249_v26, -inf }
 0x245   :  { %252 = vmax.xlane.f32.xlu0 %v251_v28 }
 0x255   :  { %2643 = vrot.lane.b32.xlu1 %v2861_v13, %s2736_s30 }
 0x259   :  { %2648 = vrot.lane.b32.xlu1 %v2861_v13, %s2737_s18 }
 0x25b   :  { %362 = vrot.lane.b32.xlu0 %v150_v10, %s2738_s1 }
 0x2d1   :  { %v256_v29 = vpop.xlane.xlu1 %255 }
 0x2d2   :  { %v258_v30 = vsub.f32 %v250_v25, %v256_v29  ;;  %v253_v31 = vpop.xlane.xlu0 %252  ;;  %v2527_v25 = vpack.c.bf16 %v156_v19, %v155_v18  ;;  %v153_v29 = vld [vmem:[%s3186_s5] sm:$0xff] }
 0x2d3   :  { %v257_v32 = vsub.f32 %v249_v26, %v253_v31  ;;  %v896_v18 = vld [vmem:[%s3191_s11 + $0x20] sm:$0xff] }
 0x2d4   :  { %v261_v33 = vmul.f32 1.442695, %v258_v30  ;;  %v154_v30 = vld [vmem:[%s3186_s5 + $0x8] sm:$0xff] }
 0x2d5   :  { %v259_v34 = vmul.f32 1.442695, %v257_v32  ;;  %v2644_v35 = vpop.permute.xlu1 %2643  ;;  %v2531_v31 = vpack.c.bf16 %v154_v30, %v153_v29 }
 0x2d6   :  { %2679 = vpow2.f32 %v261_v33  ;;  %v2646_v36 = vunpack.i.h.bf16 %v2644_v35  ;;  %v2645_v37 = vunpack.i.l.bf16 %v2644_v35  ;;  %v363_v54 = vpop.permute.xlu0 %362 }
 0x2d7   :  { %2681 = vpow2.f32 %v259_v34  ;;  %v2152_v34 = vld [vmem:[%s3187_s6] ss:$0 sm:$0xff] }
 0x2d8   :  { %v2513_v38 = vpack.c.bf16 %v2646_v36, %v2645_v37 }
 0x2d9   :  { %v2649_v39 = vpop.permute.xlu1 %2648 }
 0x2da   :  { %v2651_v40 = vunpack.i.h.bf16 %v2649_v39  ;;  %v2650_v41 = vunpack.i.l.bf16 %v2649_v39  ;;  %2514 = vmatprep.subr.bf16.mxu1 %v2513_v38 }
 0x2db   :  { %2516 = vmatpush3.bf16.msra.mxu1 %v2513_v38 }
 0x2dc   :  { %v2517_v42 = vpack.c.bf16 %v2651_v40, %v2650_v41 }
 0x2de   :  { %2519 = vmatprep.subr.msk.bf16.mxu1 %vm2867_vm2, %v2517_v42 }
 0x2e0   :  { %v2680_v43 = vpop.eup %2679 }
 0x2e1   :  { %v266_v44 = vsel %vm163_vm1, %v2680_v43, 0.0  ;;  %v2682_v45 = vpop.eup %2681 }
 0x2e2   :  { %267 = vadd.xlane.f32.xlu1 %v266_v44  ;;  %v263_v46 = vsel %vm163_vm1, %v2682_v45, 0.0 }
 0x2e6   :  { %264 = vadd.xlane.f32.xlu1 %v263_v46 }
 0x2f7   :  { %360 = vrot.lane.b32.xlu1 %v145_v12, %s2738_s1 }
 0x36f   :  { %v268_v47 = vpop.xlane.xlu1 %267 }
 0x370   :  { %2683 = vrcp.f32 %v268_v47 }
 0x373   :  { %v265_v48 = vpop.xlane.xlu1 %264 }
 0x374   :  { %2685 = vrcp.f32 %v265_v48 }
 0x377   :  { %v361_v53 = vpop.permute.xlu1 %360 }
 0x37a   :  { %v2684_v49 = vpop.eup %2683 }
 0x37b   :  { %v272_v52 = vmul.f32 %v2684_v49, %v2680_v43 }
 0x37e   :  { %v2686_v50 = vpop.eup %2685 }
 0x37f   :  { %v271_v51 = vmul.f32 %v2686_v50, %v2682_v45 }
 0x381   :  { %2344 = vmatprep.mubr.msk.f32.mxu1 %vm163_vm1, %v271_v51 }
 0x382   :  { %2345 = vmatmul.mubr.msk.f32.vlgmr.msra.gmra.mrb[2].mxu1 %vm163_vm1, %v272_v52  ;;  %v783_v52 = vld [vmem:[%s3188_s9 + $0x8] sm:$0xff] }
 0x383   :  { %2522 = vmatpush3.bf16.xpose.msk.msra.mxu1 %vm2867_vm2, %v2517_v42  ;;  %2351 = vmatprep.mubr.msk.f32.mxu1 %vm163_vm1, %v361_v53 }
 0x38a   :  { %2352 = vmatmul.mubr.msk.f32.vlgmr.msra.gmra.mrb[4].mxu1 %vm163_vm1, %v363_v54  ;;  %v784_v54 = vld [vmem:[%s3188_s9 + $0x10] sm:$0xff] }
 0x455   :  { %v2346_v55 = vpop.f32.mrb[2].mxu1 }
 0x456   :  { %v351_v56 = vpop.f32.mrb[3].mxu1 }
 0x45d   :  { %v2353_v57 = vpop.f32.mrb[4].mxu1 }
 0x45e   :  { %v452_v58 = vmul.f32 0.25, %v2353_v57  ;;  %v442_v59 = vpop.f32.mrb[5].mxu1 }
 0x45f   :  { %v451_v60 = vmul.f32 0.25, %v442_v59 }
 0x460   :  { %v454_v61 = vadd.f32 %v452_v58, %v2879_v20 }
 0x461   :  { %v453_v62 = vadd.f32 %v451_v60, %v2884_v23 }
 0x462   :  { %v458_v63 = vsel %vm163_vm1, %v454_v61, -inf }
 0x463   :  { %459 = vmax.xlane.f32.xlu0 %v458_v63  ;;  %v455_v0 = vsel %vm163_vm1, %v453_v62, -inf }
 0x464   :  { %456 = vmax.xlane.f32.xlu1 %v455_v0  ;;  %v2153_v0 = vld [vmem:[%s3189_s7] ss:$0 sm:$0xff] }
 0x4f0   :  { %v460_v1 = vpop.xlane.xlu0 %459 }
 0x4f1   :  { %v462_v2 = vsub.f32 %v454_v61, %v460_v1  ;;  %v457_v3 = vpop.xlane.xlu1 %456 }
 0x4f2   :  { %v461_v4 = vsub.f32 %v453_v62, %v457_v3 }
 0x4f3   :  { %v465_v6 = vmul.f32 1.442695, %v462_v2  ;;  %v2154_v2 = vld [vmem:[%s3190_s8] ss:$0 sm:$0xff] }
 0x4f4   :  { %v463_v8 = vmul.f32 1.442695, %v461_v4 }
 0x4f5   :  { %2687 = vpow2.f32 %v465_v6 }
 0x4f6   :  { %2689 = vpow2.f32 %v463_v8 }
 0x4ff   :  { %v2688_v9 = vpop.eup %2687 }
 0x500   :  { %v470_v10 = vsel %vm163_vm1, %v2688_v9, 0.0  ;;  %v2690_v11 = vpop.eup %2689 }
 0x501   :  { %471 = vadd.xlane.f32.xlu1 %v470_v10  ;;  %v467_v12 = vsel %vm163_vm1, %v2690_v11, 0.0 }
 0x505   :  { %468 = vadd.xlane.f32.xlu1 %v467_v12  ;;  %v893_v12 = vld [vmem:[%s3191_s11 + $0x8] sm:$0xff] }
 0x516   :  { %2653 = vrot.lane.b32.xlu1 %v2861_v13, %s2739_s19 }
 0x58e   :  { %v472_v14 = vpop.xlane.xlu1 %471 }
 0x58f   :  { %2691 = vrcp.f32 %v472_v14 }
 0x592   :  { %v469_v15 = vpop.xlane.xlu1 %468 }
 0x593   :  { %2693 = vrcp.f32 %v469_v15  ;;  %v894_v15 = vld [vmem:[%s3191_s11 + $0x10] sm:$0xff] }
 0x596   :  { %v2654_v16 = vpop.permute.xlu1 %2653 }
 0x597   :  { %v2656_v21 = vunpack.i.h.bf16 %v2654_v16  ;;  %v2655_v22 = vunpack.i.l.bf16 %v2654_v16  ;;  %v895_v16 = vld [vmem:[%s3191_s11 + $0x18] sm:$0xff] }
 0x598   :  { %v2547_v19 = vpack.c.bf16 %v895_v16, %v894_v15 }
 0x599   :  { %v2523_v24 = vpack.c.bf16 %v2656_v21, %v2655_v22  ;;  %v2692_v26 = vpop.eup %2691  ;;  %v897_v21 = vld [vmem:[%s3191_s11 + $0x28] sm:$0xff] }
 0x59a   :  { %v476_v28 = vmul.f32 %v2692_v26, %v2688_v9  ;;  %v2551_v22 = vpack.c.bf16 %v897_v21, %v896_v18 }
 0x59b   :  { %2524 = vmatprep.subr.bf16.mxu0 %v2523_v24 }
 0x59c   :  { %2526 = vmatpush3.bf16.msra.mxu0 %v2523_v24  ;;  %v898_v24 = vld [vmem:[%s3191_s11 + $0x30] sm:$0xff] }
 0x59d   :  { %v2694_v13 = vpop.eup %2693  ;;  %2528 = vmatprep.subr.bf16.mxu0 %v2527_v25 }
 0x59e   :  { %v475_v27 = vmul.f32 %v2694_v13, %v2690_v11  ;;  %v892_v11 = vld [vmem:[%s3191_s11] sm:$0xff] }
 0x59f   :  { %v2543_v14 = vpack.c.bf16 %v893_v12, %v892_v11  ;;  %v2155_v13 = vld [vmem:[%s3192_s10] ss:$0 sm:$0xff] }
 0x5a0   :  { %2358 = vmatprep.mubr.msk.f32.mxu0 %vm163_vm1, %v475_v27 }
 0x5a1   :  { %2359 = vmatmul.mubr.msk.f32.vlgmr.msra.gmra.mrb[2].mxu0 %vm163_vm1, %v476_v28 }
 0x5a2   :  { %2530 = vmatpush3.bf16.msra.mxu0 %v2527_v25  ;;  %v899_v25 = vld [vmem:[%s3191_s11 + $0x38] sm:$0xff] }
 0x5a3   :  { %2532 = vmatprep.subr.bf16.mxu0 %v2531_v31  ;;  %v2555_v26 = vpack.c.bf16 %v899_v25, %v898_v24 }
 0x674   :  { %v2360_v32 = vpop.f32.mrb[2].mxu0 }
 0x675   :  { %v555_v33 = vpop.f32.mrb[3].mxu0 }
 0x676   :  { %2365 = vmatprep.mubr.msk.f32.mxu0 %vm163_vm1, %v555_v33 }
 0x677   :  { %2366 = vmatmul.mubr.msk.f32.vlgmr.msra.gmra.mrb[4].mxu0 %vm163_vm1, %v2360_v32 }
 0x678   :  { %2534 = vmatpush3.bf16.msra.mxu0 %v2531_v31  ;;  %2372 = vmatprep.mubr.msk.f32.mxu0 %vm163_vm1, %v351_v56 }
 0x679   :  { %2544 = vmatprep.subr.bf16.mxu0 %v2543_v14 }
 0x67f   :  { %2373 = vmatmul.mubr.msk.f32.vlgmr.msra.gmra.mrb[4].mxu0 %vm163_vm1, %v2346_v55  ;;  %v785_v55 = vld [vmem:[%s3188_s9 + $0x18] sm:$0xff] }
 0x680   :  { %v2539_v56 = vpack.c.bf16 %v785_v55, %v784_v54  ;;  %2546 = vmatpush3.bf16.msra.mxu0 %v2543_v14 }
 0x681   :  { %2548 = vmatprep.subr.bf16.mxu0 %v2547_v19 }
 0x684   :  { %2550 = vmatpush3.bf16.msra.mxu0 %v2547_v19  ;;  %v2161_v19 = vld [vmem:[%s3194_s13] ss:$0 sm:$0xff] }
 0x685   :  { %2552 = vmatprep.subr.bf16.mxu0 %v2551_v22 }
 0x688   :  { %2554 = vmatpush3.bf16.msra.mxu0 %v2551_v22  ;;  %v2162_v22 = vld [vmem:[%s3195_s14] ss:$0 sm:$0xff] }
 0x689   :  { %2556 = vmatprep.subr.bf16.mxu0 %v2555_v26 }
 0x68c   :  { %2558 = vmatpush3.bf16.msra.mxu0 %v2555_v26 }
 0x752   :  { %v2374_v35 = vpop.f32.mrb[4].mxu0 }
 0x753   :  { %v717_v36 = vpop.f32.mrb[5].mxu0  ;;  %v734_v37 = vadd.f32 %v2374_v35, %v2152_v34 }
 0x754   :  { %v733_v38 = vadd.f32 %v2152_v34, %v717_v36 }
 0x755   :  { %v736_v41 = vadd.f32 %v734_v37, %v2853_v7  ;;  %v782_v7 = vld [vmem:[%s3188_s9] sm:$0xff] }
 0x756   :  { %v735_v39 = vadd.f32 %v733_v38, %v2846_v5  ;;  %v2535_v53 = vpack.c.bf16 %v783_v52, %v782_v7 }
 0x757   :  { %v742_v42 = vsel %vm71_vm0, %v736_v41, 0.0 }
 0x758   :  { %v739_v40 = vsel %vm71_vm0, %v735_v39, 0.0  ;;  %2536 = vmatprep.subr.bf16.mxu1 %v2535_v53 }
 0x759   :  { %740 = vadd.xlane.f32.xlu0 %v739_v40  ;;  %2538 = vmatpush3.bf16.msra.mxu1 %v2535_v53 }
 0x75a   :  { %2540 = vmatprep.subr.bf16.mxu1 %v2539_v56 }
 0x75d   :  { %743 = vadd.xlane.f32.xlu0 %v742_v42  ;;  %2542 = vmatpush3.bf16.msra.mxu1 %v2539_v56 }
 0x7e6   :  { %v741_v43 = vpop.xlane.xlu0 %740 }
 0x7e7   :  { %v746_v44 = vmul.f32 0.03125, %v741_v43 }
 0x7e9   :  { %v748_v45 = vsub.f32 %v735_v39, %v746_v44 }
 0x7ea   :  { %v744_v46 = vpop.xlane.xlu0 %743 }
 0x7eb   :  { %v747_v47 = vmul.f32 0.03125, %v744_v46  ;;  %v750_v48 = vmul.f32 %v748_v45, %v748_v45 }
 0x7ed   :  { %v749_v49 = vsub.f32 %v736_v41, %v747_v47  ;;  %v752_v50 = vsel %vm71_vm0, %v750_v48, 0.0 }
 0x7ee   :  { %753 = vadd.xlane.f32.xlu0 %v752_v50 }
 0x7ef   :  { %v751_v51 = vmul.f32 %v749_v49, %v749_v49 }
 0x7f1   :  { %v755_v5 = vsel %vm71_vm0, %v751_v51, 0.0 }
 0x7f2   :  { %756 = vadd.xlane.f32.xlu1 %v755_v5 }
 0x87b   :  { %v754_v57 = vpop.xlane.xlu0 %753 }
 0x87c   :  { %v758_v58 = vmul.f32 0.03125, %v754_v57 }
 0x87e   :  { %v760_v59 = vadd.f32 1e-12, %v758_v58 }
 0x87f   :  { %v757_v60 = vpop.xlane.xlu1 %756 }
 0x880   :  { %2695 = vrsqrt.f32 %v760_v59  ;;  %v759_v61 = vmul.f32 0.03125, %v757_v60 }
 0x882   :  { %v761_v62 = vadd.f32 1e-12, %v759_v61 }
 0x884   :  { %2697 = vrsqrt.f32 %v761_v62 }
 0x88a   :  { %v2696_v63 = vpop.eup %2695 }
 0x88b   :  { %v764_v1 = vmul.f32 %v2696_v63, %v748_v45 }
 0x88d   :  { %v772_v3 = vmul.f32 %v2153_v0, %v764_v1 }
 0x88e   :  { %v2698_v4 = vpop.eup %2697 }
 0x88f   :  { %v765_v6 = vmul.f32 %v2698_v4, %v749_v49  ;;  %v780_v8 = vadd.f32 %v2154_v2, %v772_v3  ;;  %v2158_v49 = vld [vmem:[%s3193_s12] ss:$0 sm:$0xff]  ;;  %v2164_v3 = vld [vmem:[%s3204_s26 + $0x28] sm:$0xff] }
 0x891   :  { %v773_v9 = vmul.f32 %v2153_v0, %v765_v6  ;;  %2383 = vmatprep.mubr.msk.f32.mxu1 %vm71_vm0, %v780_v8  ;;  %v2165_v6 = vld [vmem:[%s3204_s26 + $0x30] sm:$0xff] }
 0x893   :  { %v781_v10 = vadd.f32 %v2154_v2, %v773_v9  ;;  %v2163_v2 = vld [vmem:[%s3204_s26 + $0x20] sm:$0xff] }
 0x894   :  { %v2559_v4 = vpack.c.bf16 %v2164_v3, %v2163_v2 }
 0x895   :  { %2384 = vmatmul.mubr.msk.f32.vlgmr.msra.gmra.mrb[6].mxu1 %vm71_vm0, %v781_v10 }
 0x896   :  { %2560 = vmatprep.subr.bf16.mxu1 %v2559_v4 }
 0x897   :  { %2562 = vmatpush3.bf16.msra.mxu1 %v2559_v4 }
 0x968   :  { %v2385_v27 = vpop.f32.mrb[6].mxu1 }
 0x969   :  { %v871_v28 = vadd.f32 %v2385_v27, %v2155_v13  ;;  %v865_v29 = vpop.f32.mrb[7].mxu1 }
 0x96a   :  { %v866_v30 = vadd.f32 %v2155_v13, %v865_v29  ;;  %v2168_v29 = vld [vmem:[%s3184_s4 + $0x1] ss:$0 sm:$0xff] }
 0x96b   :  { %v877_v31 = vmul.f32 0.044715, %v871_v28  ;;  %v875_v46 = vmul.f32 0.5, %v871_v28 }
 0x96c   :  { %v876_v32 = vmul.f32 0.044715, %v866_v30  ;;  %v874_v44 = vmul.f32 0.5, %v866_v30 }
 0x96d   :  { %v879_v33 = vmul.f32 %v877_v31, %v871_v28 }
 0x96e   :  { %v878_v34 = vmul.f32 %v876_v32, %v866_v30 }
 0x96f   :  { %v881_v35 = vmul.f32 %v879_v33, %v871_v28 }
 0x970   :  { %v880_v36 = vmul.f32 %v878_v34, %v866_v30 }
 0x971   :  { %v883_v37 = vadd.f32 %v881_v35, %v871_v28 }
 0x972   :  { %v882_v38 = vadd.f32 %v880_v36, %v866_v30 }
 0x973   :  { %v885_v39 = vmul.f32 0.7978846, %v883_v37 }
 0x974   :  { %v884_v40 = vmul.f32 0.7978846, %v882_v38 }
 0x975   :  { %2699 = vtanh.f32 %v885_v39 }
 0x976   :  { %2701 = vtanh.f32 %v884_v40 }
 0x97f   :  { %v2700_v41 = vpop.eup %2699 }
 0x980   :  { %v2702_v42 = vpop.eup %2701  ;;  %v889_v43 = vadd.f32 1.0, %v2700_v41 }
 0x981   :  { %v888_v45 = vadd.f32 1.0, %v2702_v42 }
 0x982   :  { %v891_v48 = vmul.f32 %v889_v43, %v875_v46 }
 0x983   :  { %v890_v47 = vmul.f32 %v888_v45, %v874_v44 }
 0x985   :  { %2402 = vmatprep.mubr.msk.f32.mxu0 %vm907_vm3, %v890_v47 }
 0x986   :  { %2403 = vmatmul.mubr.msk.f32.vlgmr.msra.gmra.mrb[6].mxu0 %vm907_vm3, %v891_v48 }
 0xa59   :  { %v2404_v50 = vpop.f32.mrb[6].mxu0 }
 0xa5a   :  { %v980_v51 = vpop.f32.mrb[7].mxu0  ;;  %v986_v5 = vadd.f32 %v2404_v50, %v2158_v49 }
 0xa5b   :  { %v981_v7 = vadd.f32 %v2158_v49, %v980_v51 }
 0xa5c   :  { %v990_v54 = vadd.f32 %v986_v5, %v781_v10 }
 0xa5d   :  { %v989_v52 = vadd.f32 %v981_v7, %v780_v8  ;;  %v2166_v8 = vld [vmem:[%s3204_s26 + $0x38] sm:$0xff] }
 0xa5e   :  { %v996_v55 = vsel %vm71_vm0, %v990_v54, 0.0  ;;  %v2563_v9 = vpack.c.bf16 %v2166_v8, %v2165_v6 }
 0xa5f   :  { %v993_v53 = vsel %vm71_vm0, %v989_v52, 0.0 }
 0xa60   :  { %994 = vadd.xlane.f32.xlu0 %v993_v53  ;;  %2564 = vmatprep.subr.bf16.mxu1 %v2563_v9 }
 0xa61   :  { %2566 = vmatpush3.bf16.msra.mxu1 %v2563_v9 }
 0xa64   :  { %997 = vadd.xlane.f32.xlu0 %v996_v55 }
 0xaed   :  { %v995_v56 = vpop.xlane.xlu0 %994 }
 0xaee   :  { %v999_v57 = vmul.f32 0.03125, %v995_v56 }
 0xaf0   :  { %v1001_v58 = vsub.f32 %v989_v52, %v999_v57 }
 0xaf1   :  { %v998_v59 = vpop.xlane.xlu0 %997 }
 0xaf2   :  { %v1000_v60 = vmul.f32 0.03125, %v998_v59  ;;  %v1003_v61 = vmul.f32 %v1001_v58, %v1001_v58 }
 0xaf4   :  { %v1002_v62 = vsub.f32 %v990_v54, %v1000_v60  ;;  %v1005_v63 = vsel %vm71_vm0, %v1003_v61, 0.0 }
 0xaf5   :  { %1006 = vadd.xlane.f32.xlu0 %v1005_v63 }
 0xaf6   :  { %v1004_v0 = vmul.f32 %v1002_v62, %v1002_v62 }
 0xaf8   :  { %v1008_v1 = vsel %vm71_vm0, %v1004_v0, 0.0 }
 0xaf9   :  { %1009 = vadd.xlane.f32.xlu0 %v1008_v1 }
 0xb82   :  { %v1007_v10 = vpop.xlane.xlu0 %1006 }
 0xb83   :  { %v1011_v11 = vmul.f32 0.03125, %v1007_v10 }
 0xb85   :  { %v1013_v12 = vadd.f32 1e-12, %v1011_v11 }
 0xb86   :  { %v1010_v14 = vpop.xlane.xlu0 %1009 }
 0xb87   :  { %2703 = vrsqrt.f32 %v1013_v12  ;;  %v1012_v15 = vmul.f32 0.03125, %v1010_v14 }
 0xb89   :  { %v1014_v16 = vadd.f32 1e-12, %v1012_v15 }
 0xb8b   :  { %2705 = vrsqrt.f32 %v1014_v16 }
 0xb91   :  { %v2704_v18 = vpop.eup %2703 }
 0xb92   :  { %v1017_v21 = vmul.f32 %v2704_v18, %v1001_v58 }
 0xb94   :  { %v1025_v24 = vmul.f32 %v2161_v19, %v1017_v21 }
 0xb95   :  { %v2706_v25 = vpop.eup %2705 }
 0xb96   :  { %v1018_v26 = vmul.f32 %v2706_v25, %v1002_v62  ;;  %v3015_v13 = vadd.f32 %v2162_v22, %v1025_v24 }
 0xb98   :  { %v1026_v27 = vmul.f32 %v2161_v19, %v1018_v26  ;;  %2413 = vmatprep.mubr.msk.f32.mxu1 %vm71_vm0, %v3015_v13 }
 0xb9a   :  { %v3019_v28 = vadd.f32 %v2162_v22, %v1026_v27 }
 0xb9c   :  { %2414 = vmatmul.mubr.msk.f32.vlgmr.msra.gmra.mrb[8].mxu1 %vm71_vm0, %v3019_v28 }
 0xc6f   :  { %v2415_v30 = vpop.f32.mrb[8].mxu1 }
 0xc70   :  { %v1126_v31 = vadd.f32 %v2415_v30, %v2168_v29  ;;  %v1120_v32 = vpop.f32.mrb[9].mxu1 }
 0xc71   :  { %v1121_v33 = vadd.f32 %v2168_v29, %v1120_v32 }
 0xc73   :  { %2420 = vmatprep.mubr.msk.f32.mxu1 %vm163_vm1, %v1121_v33  ;;  %v3027_v34 = vpack.i.bf16 %v1126_v31, %v1121_v33 }
 0xc75   :  { %2663 = vrot.lane.b32.xlu1 %v3027_v34, %s2737_s18  ;;  %2658 = vrot.lane.b32.xlu0 %v3027_v34, %s2735_s25 }
 0xc79   :  { %1336 = vrot.lane.b32.xlu0 %v1121_v33, %s2738_s1 }
 0xc7d   :  { %1338 = vrot.lane.b32.xlu0 %v1126_v31, %s2738_s1 }
 0xce7   :  { %v2664_v35 = vpop.permute.xlu1 %2663  ;;  %v2659_v36 = vpop.permute.xlu0 %2658 }
 0xce8   :  { %v2666_v37 = vunpack.i.h.bf16 %v2664_v35  ;;  %v2665_v38 = vunpack.i.l.bf16 %v2664_v35  ;;  %v2661_v39 = vunpack.i.h.bf16 %v2659_v36  ;;  %v2660_v40 = vunpack.i.l.bf16 %v2659_v36 }
 0xcea   :  { %v2567_v41 = vpack.c.bf16 %v2661_v39, %v2660_v40  ;;  %v2577_v42 = vpack.c.bf16 %v2666_v37, %v2665_v38  ;;  %v2173_v39 = vld [vmem:[%s3186_s5 + $0x30] sm:$0xff]  ;;  %v2174_v40 = vld [vmem:[%s3186_s5 + $0x38] sm:$0xff] }
 0xceb   :  { %v1337_v43 = vpop.permute.xlu0 %1336 }
 0xcec   :  { %2569 = vmatprep.subr.msk.bf16.mxu1 %vm2867_vm2, %v2567_v41 }
 0xced   :  { %2572 = vmatpush3.bf16.xpose.msk.msra.mxu1 %vm2867_vm2, %v2567_v41  ;;  %v2587_v41 = vpack.c.bf16 %v2174_v40, %v2173_v39 }
 0xcee   :  { %2579 = vmatprep.subr.msk.bf16.mxu1 %vm2867_vm2, %v2577_v42 }
 0xcef   :  { %v1339_v44 = vpop.permute.xlu0 %1338 }
 0xcf4   :  { %2421 = vmatmul.mubr.msk.f32.vlgmr.msra.gmra.mrb[10].mxu1 %vm163_vm1, %v1126_v31 }
 0xcf5   :  { %2582 = vmatpush3.bf16.xpose.msk.msra.mxu1 %vm2867_vm2, %v2577_v42  ;;  %2434 = vmatprep.mubr.msk.f32.mxu1 %vm163_vm1, %v1337_v43  ;;  %v2171_v42 = vld [vmem:[%s3186_s5 + $0x20] sm:$0xff]  ;;  %v2172_v43 = vld [vmem:[%s3186_s5 + $0x28] sm:$0xff] }
 0xcfc   :  { %2435 = vmatmul.mubr.msk.f32.vlgmr.msra.gmra.mrb[12].mxu1 %vm163_vm1, %v1339_v44  ;;  %v2591_v44 = vpack.c.bf16 %v2172_v43, %v2171_v42 }
 0xdc7   :  { %v2422_v45 = vpop.f32.mrb[10].mxu1 }
 0xdc8   :  { %v1224_v46 = vmul.f32 0.25, %v2422_v45  ;;  %v1214_v47 = vpop.f32.mrb[11].mxu1 }
 0xdc9   :  { %v1223_v48 = vmul.f32 0.25, %v1214_v47 }
 0xdca   :  { %v1226_v49 = vadd.f32 %v1224_v46, %v2879_v20 }
 0xdcb   :  { %v1225_v50 = vadd.f32 %v1223_v48, %v2884_v23 }
 0xdcc   :  { %v1230_v51 = vsel %vm163_vm1, %v1226_v49, -inf }
 0xdcd   :  { %1231 = vmax.xlane.f32.xlu1 %v1230_v51  ;;  %v1227_v5 = vsel %vm163_vm1, %v1225_v50, -inf }
 0xdce   :  { %1228 = vmax.xlane.f32.xlu0 %v1227_v5 }
 0xdcf   :  { %v2436_v17 = vpop.f32.mrb[12].mxu1 }
 0xdd0   :  { %v1418_v7 = vpop.f32.mrb[13].mxu1  ;;  %v1428_v52 = vmul.f32 0.25, %v2436_v17 }
 0xdd1   :  { %v1427_v53 = vmul.f32 0.25, %v1418_v7 }
 0xdd2   :  { %v1430_v56 = vadd.f32 %v1428_v52, %v2879_v20 }
 0xdd3   :  { %v1429_v54 = vadd.f32 %v1427_v53, %v2884_v23 }
 0xdd4   :  { %v1434_v57 = vsel %vm163_vm1, %v1430_v56, -inf }
 0xdd5   :  { %v1431_v55 = vsel %vm163_vm1, %v1429_v54, -inf }
 0xdd6   :  { %1432 = vmax.xlane.f32.xlu0 %v1431_v55 }
 0xdda   :  { %1435 = vmax.xlane.f32.xlu0 %v1434_v57 }
 0xe5a   :  { %v1232_v58 = vpop.xlane.xlu1 %1231 }
 0xe5b   :  { %v1234_v59 = vsub.f32 %v1226_v49, %v1232_v58  ;;  %v1229_v60 = vpop.xlane.xlu0 %1228  ;;  %v2192_v49 = vld [vmem:[%s3187_s6 + $0x1] ss:$0 sm:$0xff] }
 0xe5c   :  { %v1233_v61 = vsub.f32 %v1225_v50, %v1229_v60 }
 0xe5d   :  { %v1237_v62 = vmul.f32 1.442695, %v1234_v59 }
 0xe5e   :  { %v1235_v63 = vmul.f32 1.442695, %v1233_v61 }
 0xe5f   :  { %2707 = vpow2.f32 %v1237_v62 }
 0xe60   :  { %2709 = vpow2.f32 %v1235_v63 }
 0xe63   :  { %v1433_v0 = vpop.xlane.xlu0 %1432 }
 0xe64   :  { %v1437_v1 = vsub.f32 %v1429_v54, %v1433_v0  ;;  %v2198_v0 = vld [vmem:[%s3188_s9 + $0x28] sm:$0xff] }
 0xe66   :  { %v1439_v2 = vmul.f32 1.442695, %v1437_v1 }
 0xe67   :  { %v1436_v23 = vpop.xlane.xlu0 %1435 }
 0xe68   :  { %2711 = vpow2.f32 %v1439_v2  ;;  %v1438_v3 = vsub.f32 %v1430_v56, %v1436_v23  ;;  %v2199_v2 = vld [vmem:[%s3188_s9 + $0x30] sm:$0xff]  ;;  %v2200_v23 = vld [vmem:[%s3188_s9 + $0x38] sm:$0xff] }
 0xe69   :  { %v2708_v4 = vpop.eup %2707 }
 0xe6a   :  { %v2710_v20 = vpop.eup %2709  ;;  %v1441_v6 = vmul.f32 1.442695, %v1438_v3  ;;  %v1242_v8 = vsel %vm163_vm1, %v2708_v4, 0.0  ;;  %v2599_v3 = vpack.c.bf16 %v2200_v23, %v2199_v2 }
 0xe6b   :  { %1243 = vadd.xlane.f32.xlu1 %v1242_v8  ;;  %v1239_v9 = vsel %vm163_vm1, %v2710_v20, 0.0 }
 0xe6c   :  { %2713 = vpow2.f32 %v1441_v6  ;;  %1240 = vadd.xlane.f32.xlu0 %v1239_v9 }
 0xe72   :  { %v2712_v10 = vpop.eup %2711 }
 0xe73   :  { %v1443_v11 = vsel %vm163_vm1, %v2712_v10, 0.0 }
 0xe74   :  { %1444 = vadd.xlane.f32.xlu0 %v1443_v11 }
 0xe76   :  { %v2714_v12 = vpop.eup %2713 }
 0xe77   :  { %v1446_v14 = vsel %vm163_vm1, %v2714_v12, 0.0 }
 0xe78   :  { %1447 = vadd.xlane.f32.xlu1 %v1446_v14 }
 0xe89   :  { %2673 = vrot.lane.b32.xlu1 %v3027_v34, %s2739_s19 }
 0xe8a   :  { %2668 = vrot.lane.b32.xlu0 %v3027_v34, %s2736_s30 }
 0xef8   :  { %v1244_v16 = vpop.xlane.xlu1 %1243 }
 0xef9   :  { %v1241_v15 = vpop.xlane.xlu0 %1240 }
 0xefa   :  { %2715 = vrcp.f32 %v1241_v15 }
 0xefb   :  { %2717 = vrcp.f32 %v1244_v16 }
 0xf01   :  { %v1445_v18 = vpop.xlane.xlu0 %1444 }
 0xf02   :  { %2719 = vrcp.f32 %v1445_v18  ;;  %v2196_v18 = vld [vmem:[%s3190_s8 + $0x1] ss:$0 sm:$0xff] }
 0xf04   :  { %v2716_v19 = vpop.eup %2715 }
 0xf05   :  { %v1448_v21 = vpop.xlane.xlu1 %1447  ;;  %v2669_v22 = vpop.permute.xlu0 %2668  ;;  %v1247_v24 = vmul.f32 %v2716_v19, %v2710_v20 }
 0xf06   :  { %2721 = vrcp.f32 %v1448_v21  ;;  %v2671_v25 = vunpack.i.h.bf16 %v2669_v22  ;;  %v2670_v26 = vunpack.i.l.bf16 %v2669_v22  ;;  %v2718_v29 = vpop.eup %2717 }
 0xf07   :  { %2427 = vmatprep.mubr.msk.f32.mxu0 %vm163_vm1, %v1247_v24  ;;  %v1248_v34 = vmul.f32 %v2718_v29, %v2708_v4  ;;  %v2207_v29 = vld [vmem:[%s3191_s11 + $0x50] sm:$0xff] }
 0xf08   :  { %v2573_v27 = vpack.c.bf16 %v2671_v25, %v2670_v26  ;;  %v2205_v25 = vld [vmem:[%s3191_s11 + $0x40] sm:$0xff]  ;;  %v2206_v26 = vld [vmem:[%s3191_s11 + $0x48] sm:$0xff] }
 0xf09   :  { %v2674_v30 = vpop.permute.xlu1 %2673 }
 0xf0a   :  { %v2676_v31 = vunpack.i.h.bf16 %v2674_v30  ;;  %v2675_v32 = vunpack.i.l.bf16 %v2674_v30  ;;  %2574 = vmatprep.subr.bf16.mxu0 %v2573_v27  ;;  %v2208_v30 = vld [vmem:[%s3191_s11 + $0x58] sm:$0xff] }
 0xf0b   :  { %2576 = vmatpush3.bf16.msra.mxu0 %v2573_v27  ;;  %v2603_v27 = vpack.c.bf16 %v2206_v26, %v2205_v25 }
 0xf0c   :  { %v2720_v33 = vpop.eup %2719  ;;  %v2583_v35 = vpack.c.bf16 %v2676_v31, %v2675_v32  ;;  %v2209_v31 = vld [vmem:[%s3191_s11 + $0x60] sm:$0xff]  ;;  %v2607_v32 = vpack.c.bf16 %v2208_v30, %v2207_v29 }
 0xf0d   :  { %v1451_v36 = vmul.f32 %v2720_v33, %v2712_v10  ;;  %v2210_v33 = vld [vmem:[%s3191_s11 + $0x68] sm:$0xff] }
 0xf0e   :  { %2428 = vmatmul.mubr.msk.f32.vlgmr.msra.gmra.mrb[8].mxu0 %vm163_vm1, %v1248_v34  ;;  %2584 = vmatprep.subr.bf16.mxu0 %v2583_v35  ;;  %v2611_v34 = vpack.c.bf16 %v2210_v33, %v2209_v31 }
 0xf0f   :  { %2586 = vmatpush3.bf16.msra.mxu0 %v2583_v35  ;;  %2441 = vmatprep.mubr.msk.f32.mxu0 %vm163_vm1, %v1451_v36  ;;  %v2211_v35 = vld [vmem:[%s3191_s11 + $0x70] sm:$0xff]  ;;  %v2212_v36 = vld [vmem:[%s3191_s11 + $0x78] sm:$0xff] }
 0xf10   :  { %v2722_v37 = vpop.eup %2721  ;;  %2588 = vmatprep.subr.bf16.mxu0 %v2587_v41 }
 0xf11   :  { %v1452_v38 = vmul.f32 %v2722_v37, %v2714_v12  ;;  %v2195_v12 = vld [vmem:[%s3189_s7 + $0x1] ss:$0 sm:$0xff]  ;;  %v2615_v37 = vpack.c.bf16 %v2212_v36, %v2211_v35 }
 0xf13   :  { %2442 = vmatmul.mubr.msk.f32.vlgmr.msra.gmra.mrb[10].mxu0 %vm163_vm1, %v1452_v38  ;;  %v2202_v38 = vld [vmem:[%s3192_s10 + $0x1] ss:$0 sm:$0xff] }
 0xf14   :  { %2590 = vmatpush3.bf16.msra.mxu0 %v2587_v41 }
 0xf15   :  { %2592 = vmatprep.subr.bf16.mxu0 %v2591_v44 }
 0xfe1   :  { %v2429_v45 = vpop.f32.mrb[8].mxu0 }
 0xfe2   :  { %v1327_v46 = vpop.f32.mrb[9].mxu0 }
 0xfe6   :  { %v2443_v47 = vpop.f32.mrb[10].mxu0 }
 0xfe7   :  { %v1531_v48 = vpop.f32.mrb[11].mxu0 }
 0xfe8   :  { %2448 = vmatprep.mubr.msk.f32.mxu0 %vm163_vm1, %v1531_v48 }
 0xfe9   :  { %2449 = vmatmul.mubr.msk.f32.vlgmr.msra.gmra.mrb[12].mxu0 %vm163_vm1, %v2443_v47 }
 0xfea   :  { %2594 = vmatpush3.bf16.msra.mxu0 %v2591_v44  ;;  %2455 = vmatprep.mubr.msk.f32.mxu0 %vm163_vm1, %v1327_v46 }
 0xfeb   :  { %2604 = vmatprep.subr.bf16.mxu0 %v2603_v27 }
 0xff1   :  { %2456 = vmatmul.mubr.msk.f32.vlgmr.msra.gmra.mrb[12].mxu0 %vm163_vm1, %v2429_v45 }
 0xff2   :  { %2606 = vmatpush3.bf16.msra.mxu0 %v2603_v27 }
 0xff3   :  { %2608 = vmatprep.subr.bf16.mxu0 %v2607_v32 }
 0xff6   :  { %2610 = vmatpush3.bf16.msra.mxu0 %v2607_v32 }
 0xff7   :  { %2612 = vmatprep.subr.bf16.mxu0 %v2611_v34 }
 0xffa   :  { %2614 = vmatpush3.bf16.msra.mxu0 %v2611_v34  ;;  %v2219_v34 = vld [vmem:[%s3194_s13 + $0x1] ss:$0 sm:$0xff] }
 0xffb   :  { %2616 = vmatprep.subr.bf16.mxu0 %v2615_v37 }
 0xffe   :  { %2618 = vmatpush3.bf16.msra.mxu0 %v2615_v37 }
0x10c4   :  { %v2457_v50 = vpop.f32.mrb[12].mxu0 }
0x10c5   :  { %v1711_v51 = vadd.f32 %v2457_v50, %v2192_v49  ;;  %v1693_v5 = vpop.f32.mrb[13].mxu0 }
0x10c6   :  { %v1710_v17 = vadd.f32 %v2192_v49, %v1693_v5 }
0x10c7   :  { %v1713_v7 = vadd.f32 %v1711_v51, %v3019_v28 }
0x10c8   :  { %v1712_v52 = vadd.f32 %v1710_v17, %v3015_v13  ;;  %v2197_v13 = vld [vmem:[%s3188_s9 + $0x20] sm:$0xff] }
0x10c9   :  { %v1721_v53 = vsel %vm71_vm0, %v1713_v7, 0.0  ;;  %v2595_v1 = vpack.c.bf16 %v2198_v0, %v2197_v13 }
0x10ca   :  { %1722 = vadd.xlane.f32.xlu0 %v1721_v53  ;;  %v1718_v54 = vsel %vm71_vm0, %v1712_v52, 0.0 }
0x10cb   :  { %1719 = vadd.xlane.f32.xlu1 %v1718_v54  ;;  %2596 = vmatprep.subr.bf16.mxu1 %v2595_v1 }
0x10cc   :  { %2598 = vmatpush3.bf16.msra.mxu1 %v2595_v1 }
0x10cd   :  { %2600 = vmatprep.subr.bf16.mxu1 %v2599_v3 }
0x10d0   :  { %2602 = vmatpush3.bf16.msra.mxu1 %v2599_v3 }
0x1157   :  { %v1723_v55 = vpop.xlane.xlu0 %1722 }
0x1158   :  { %v1725_v56 = vmul.f32 0.03125, %v1723_v55  ;;  %v1720_v57 = vpop.xlane.xlu1 %1719 }
0x1159   :  { %v1724_v58 = vmul.f32 0.03125, %v1720_v57 }
0x115a   :  { %v1727_v59 = vsub.f32 %v1713_v7, %v1725_v56 }
0x115b   :  { %v1726_v60 = vsub.f32 %v1712_v52, %v1724_v58  ;;  %v2214_v58 = vld [vmem:[%s3193_s12 + $0x1] ss:$0 sm:$0xff] }
0x115c   :  { %v1729_v61 = vmul.f32 %v1727_v59, %v1727_v59 }
0x115d   :  { %v1728_v62 = vmul.f32 %v1726_v60, %v1726_v60 }
0x115e   :  { %v1733_v63 = vsel %vm71_vm0, %v1729_v61, 0.0 }
0x115f   :  { %1734 = vadd.xlane.f32.xlu1 %v1733_v63  ;;  %v1730_v28 = vsel %vm71_vm0, %v1728_v62, 0.0 }
0x1160   :  { %1731 = vadd.xlane.f32.xlu0 %v1730_v28 }
0x11ec   :  { %v1735_v4 = vpop.xlane.xlu1 %1734 }
0x11ed   :  { %v1737_v20 = vmul.f32 0.03125, %v1735_v4  ;;  %v1732_v6 = vpop.xlane.xlu0 %1731 }
0x11ee   :  { %v1736_v8 = vmul.f32 0.03125, %v1732_v6 }
0x11ef   :  { %v1739_v9 = vadd.f32 1e-12, %v1737_v20 }
0x11f0   :  { %v1738_v10 = vadd.f32 1e-12, %v1736_v8 }
0x11f1   :  { %2723 = vrsqrt.f32 %v1739_v9 }
0x11f2   :  { %2725 = vrsqrt.f32 %v1738_v10 }
0x11fb   :  { %v2724_v11 = vpop.eup %2723 }
0x11fc   :  { %v2726_v14 = vpop.eup %2725  ;;  %v1743_v15 = vmul.f32 %v2724_v11, %v1727_v59  ;;  %v2018_v11 = vld [vmem:[%s3196_s15] sm:$0xff] }
0x11fd   :  { %v1742_v16 = vmul.f32 %v2726_v14, %v1726_v60 }
0x11fe   :  { %v1751_v19 = vmul.f32 %v2195_v12, %v1743_v15  ;;  %v2020_v15 = vld [vmem:[%s3196_s15 + $0x10] sm:$0xff] }
0x11ff   :  { %v1750_v21 = vmul.f32 %v2195_v12, %v1742_v16  ;;  %v2019_v12 = vld [vmem:[%s3196_s15 + $0x8] sm:$0xff]  ;;  %v2021_v16 = vld [vmem:[%s3196_s15 + $0x18] sm:$0xff] }
0x1200   :  { %v1759_v24 = vadd.f32 %v2196_v18, %v1751_v19  ;;  %v2619_v14 = vpack.c.bf16 %v2019_v12, %v2018_v11  ;;  %v2740_v19 = vmov 0  }
0x1201   :  { %v1758_v22 = vadd.f32 %v2196_v18, %v1750_v21  ;;  %v2623_v18 = vpack.c.bf16 %v2021_v16, %v2020_v15  ;;  %2678 = vset.pattern.permute.xlu1 %v2740_v19  ;;  %2677 = vset.pattern.permute.xlu0 %v2740_v19  ;;  %v2111_v21 = vld [vmem:[%s3197_s2 + $0x8] sm:$0xff] }
0x1202   :  { %2620 = vmatprep.subr.bf16.mxu1 %v2619_v14  ;;  %vm2113_vm4 = vcmp.gt.f32.partialorder %v2111_v21, 0.5 }
0x1203   :  { %2466 = vmatprep.mubr.msk.f32.mxu1 %vm71_vm0, %v1758_v22 }
0x1204   :  { %2467 = vmatmul.mubr.msk.f32.vlgmr.msra.gmra.mrb[14].mxu1 %vm71_vm0, %v1759_v24 }
0x1205   :  { %2622 = vmatpush3.bf16.msra.mxu1 %v2619_v14 }
0x1206   :  { %2624 = vmatprep.subr.bf16.mxu1 %v2623_v18 }
0x1209   :  { %2626 = vmatpush3.bf16.msra.mxu1 %v2623_v18 }
0x12d7   :  { %v2468_v39 = vpop.f32.mrb[14].mxu1 }
0x12d8   :  { %v1851_v40 = vadd.f32 %v2468_v39, %v2202_v38  ;;  %v1845_v41 = vpop.f32.mrb[15].mxu1 }
0x12d9   :  { %v1846_v42 = vadd.f32 %v2202_v38, %v1845_v41  ;;  %v2220_v38 = vld [vmem:[%s3195_s14 + $0x1] ss:$0 sm:$0xff] }
0x12da   :  { %v1857_v43 = vmul.f32 0.044715, %v1851_v40  ;;  %v1855_v55 = vmul.f32 0.5, %v1851_v40 }
0x12db   :  { %v1856_v44 = vmul.f32 0.044715, %v1846_v42  ;;  %v1854_v53 = vmul.f32 0.5, %v1846_v42 }
0x12dc   :  { %v1859_v45 = vmul.f32 %v1857_v43, %v1851_v40 }
0x12dd   :  { %v1858_v46 = vmul.f32 %v1856_v44, %v1846_v42  ;;  %v2221_v44 = vld [vmem:[%s3198_s16] ss:$0 sm:$0xff] }
0x12de   :  { %v1861_v47 = vmul.f32 %v1859_v45, %v1851_v40 }
0x12df   :  { %v1860_v48 = vmul.f32 %v1858_v46, %v1846_v42 }
0x12e0   :  { %v1863_v49 = vadd.f32 %v1861_v47, %v1851_v40 }
0x12e1   :  { %v1862_v50 = vadd.f32 %v1860_v48, %v1846_v42 }
0x12e2   :  { %v1865_v51 = vmul.f32 0.7978846, %v1863_v49 }
0x12e3   :  { %v1864_v5 = vmul.f32 0.7978846, %v1862_v50 }
0x12e4   :  { %2727 = vtanh.f32 %v1865_v51 }
0x12e5   :  { %2729 = vtanh.f32 %v1864_v5 }
0x12ee   :  { %v2728_v17 = vpop.eup %2727 }
0x12ef   :  { %v2730_v7 = vpop.eup %2729  ;;  %v1869_v52 = vadd.f32 1.0, %v2728_v17 }
0x12f0   :  { %v1868_v54 = vadd.f32 1.0, %v2730_v7 }
0x12f1   :  { %v1871_v57 = vmul.f32 %v1869_v52, %v1855_v55 }
0x12f2   :  { %v1870_v56 = vmul.f32 %v1868_v54, %v1854_v53 }
0x12f4   :  { %2485 = vmatprep.mubr.msk.f32.mxu0 %vm907_vm3, %v1870_v56 }
0x12f5   :  { %2486 = vmatmul.mubr.msk.f32.vlgmr.msra.gmra.mrb[14].mxu0 %vm907_vm3, %v1871_v57 }
0x13c8   :  { %v2487_v59 = vpop.f32.mrb[14].mxu0 }
0x13c9   :  { %v1967_v60 = vadd.f32 %v2487_v59, %v2214_v58  ;;  %v1961_v61 = vpop.f32.mrb[15].mxu0 }
0x13ca   :  { %v1962_v62 = vadd.f32 %v2214_v58, %v1961_v61 }
0x13cb   :  { %v1971_v63 = vadd.f32 %v1967_v60, %v1759_v24  ;;  %v2115_v24 = vsel %vm2113_vm4, 1, %v2740_v19 }
0x13cc   :  { %v1970_v28 = vadd.f32 %v1962_v62, %v1758_v22  ;;  %v2110_v22 = vld [vmem:[%s3197_s2] sm:$0xff] }
0x13cd   :  { %v1979_v13 = vsel %vm71_vm0, %v1971_v63, 0.0  ;;  %vm2112_vm5 = vcmp.gt.f32.partialorder %v2110_v22, 0.5 }
0x13ce   :  { %1980 = vadd.xlane.f32.xlu1 %v1979_v13  ;;  %v1976_v0 = vsel %vm71_vm0, %v1970_v28, 0.0  ;;  %v2114_v25 = vsel %vm2112_vm5, 1, %v2740_v19 }
0x13cf   :  { %1977 = vadd.xlane.f32.xlu0 %v1976_v0 }
0x145b   :  { %v1981_v1 = vpop.xlane.xlu1 %1980 }
0x145c   :  { %v1983_v2 = vmul.f32 0.03125, %v1981_v1  ;;  %v1978_v23 = vpop.xlane.xlu0 %1977 }
0x145d   :  { %v1982_v3 = vmul.f32 0.03125, %v1978_v23 }
0x145e   :  { %v1985_v4 = vsub.f32 %v1971_v63, %v1983_v2 }
0x145f   :  { %v1984_v20 = vsub.f32 %v1970_v28, %v1982_v3 }
0x1460   :  { %v1987_v6 = vmul.f32 %v1985_v4, %v1985_v4 }
0x1461   :  { %v1986_v8 = vmul.f32 %v1984_v20, %v1984_v20 }
0x1462   :  { %v1991_v9 = vsel %vm71_vm0, %v1987_v6, 0.0 }
0x1463   :  { %1992 = vadd.xlane.f32.xlu1 %v1991_v9  ;;  %v1988_v10 = vsel %vm71_vm0, %v1986_v8, 0.0 }
0x1464   :  { %1989 = vadd.xlane.f32.xlu0 %v1988_v10 }
0x1474   :  { %2120 = vperm.xlu1 %2678, %v2115_v24  }
0x147a   :  { %2117 = vperm.xlu0 %2677, %v2114_v25  }
0x14f0   :  { %v1993_v26 = vpop.xlane.xlu1 %1992 }
0x14f1   :  { %v1995_v27 = vmul.f32 0.03125, %v1993_v26  ;;  %v1990_v29 = vpop.xlane.xlu0 %1989 }
0x14f2   :  { %v1994_v30 = vmul.f32 0.03125, %v1990_v29 }
0x14f3   :  { %v1997_v31 = vadd.f32 1e-12, %v1995_v27 }
0x14f4   :  { %v1996_v32 = vadd.f32 1e-12, %v1994_v30  ;;  %v2121_v43 = vpop.permute.xlu1 %2120 }
0x14f5   :  { %2731 = vrsqrt.f32 %v1997_v31  ;;  %vm2123_vm6 = vcmp.eq.s32.totalorder %v2121_v43, 1 }
0x14f6   :  { %2733 = vrsqrt.f32 %v1996_v32 }
0x14f9   :  { %v2118_v45 = vpop.permute.xlu0 %2117 }
0x14fa   :  { %vm2122_vm8 = vcmp.eq.s32.totalorder %v2118_v45, 1 }
0x14ff   :  { %v2732_v33 = vpop.eup %2731 }
0x1500   :  { %v2734_v35 = vpop.eup %2733  ;;  %v2001_v36 = vmul.f32 %v2732_v33, %v1985_v4 }
0x1501   :  { %v2000_v37 = vmul.f32 %v2734_v35, %v1984_v20 }
0x1502   :  { %v2009_v39 = vmul.f32 %v2219_v34, %v2001_v36 }
0x1503   :  { %v2008_v40 = vmul.f32 %v2219_v34, %v2000_v37 }
0x1504   :  { %v2017_v42 = vadd.f32 %v2220_v38, %v2009_v39 }
0x1505   :  { %v2016_v41 = vadd.f32 %v2220_v38, %v2008_v40 }
0x1507   :  { %2496 = vmatprep.mubr.msk.f32.mxu1 %vm71_vm0, %v2016_v41 }
0x1508   :  { %2497 = vmatmul.mubr.msk.f32.vlgmr.msra.gmra.mrb[16].mxu1 %vm71_vm0, %v2017_v42 }
0x15db   :  { %v2498_v46 = vpop.f32.mrb[16].mxu1 }
0x15dc   :  { %v2107_v47 = vadd.f32 %v2498_v46, %v2221_v44  ;;  %v2101_v48 = vpop.f32.mrb[17].mxu1 }
0x15dd   :  { %v2102_v49 = vadd.f32 %v2221_v44, %v2101_v48 }
0x15de   :  { %v2125_v50 = vsel %vm2123_vm6, -inf, %v2107_v47 }
0x15df   :  { %2128 = vst.msk [vmem:[%s3199_s17 + $0x8] sm:$0xff] %vm2126_vm7, %v2125_v50  ;;  %v2124_v51 = vsel %vm2122_vm8, -inf, %v2102_v49 }
0x15e0   :  { %2127 = vst.msk [vmem:[%s3199_s17] sm:$0xff] %vm2126_vm7, %v2124_v51 }

</bundles_post_ra>
